<compile_context>
chip_gen: v5e
topology: v5e:2x2
jax: 0.10.0
libtpu: 0.0.40
codegen_flags: <defaults>
</compile_context>

<pallas_src>
import functools

import jax
import jax.numpy as jnp
from jax.experimental import pallas as pl
from jax.experimental.pallas import tpu as pltpu


# ----------------------------------------------------------------------------
# Fused kernel: stacked LSTM (unrolled recurrence) + sigmoid head.
# Gate order follows PyTorch: [i, f, g, o].
# ----------------------------------------------------------------------------
def _make_fused_kernel(meta, B, T):
    num_layers, _input_size, H, layer_meta, head_off = meta
    four_h = 4 * H
    f32 = jnp.float32
    bf16 = jnp.bfloat16

    def kernel(x_ref, p_ref, out_ref):
        # Lane mask selecting the tanh ('g') gate block inside the fused
        # (B, 4H) activation tile -- hoisted out of all loops.
        lane = jax.lax.broadcasted_iota(jnp.int32, (B, four_h), 1)
        g_mask = jnp.logical_and(lane >= 2 * H, lane < 3 * H)

        # Layer-0 input projection hoisted out of the recurrence: one
        # (T*B, I) x (I, 4H) matmul covering all timesteps (bf16 operands,
        # f32 accumulate).  x is time-major, so each per-step (B, 4H) slab
        # below is a contiguous, sublane-aligned slice.
        wih0_off, in0, _, b0_off = layer_meta[0]
        wih0 = p_ref[wih0_off:wih0_off + in0, :].astype(bf16)
        b0 = p_ref[b0_off:b0_off + 1, :]
        xp_all = jnp.dot(x_ref[...].astype(bf16), wih0,
                         preferred_element_type=f32) + b0            # (T*B, 4H)
        xp = [xp_all[t * B:(t + 1) * B, :] for t in range(T)]

        h = None
        for l in range(num_layers):
            _, _, whh_off, _ = layer_meta[l]
            whh = p_ref[whh_off:whh_off + H, :].astype(bf16)          # (H, 4H)
            last = l == num_layers - 1
            if not last:
                nx_wih_off, nx_in, _, nx_b_off = layer_meta[l + 1]
                wih_next = p_ref[nx_wih_off:nx_wih_off + nx_in, :].astype(bf16)
                b_next = p_ref[nx_b_off:nx_b_off + 1, :]
                xp_next = []

            c = None
            h_bf = None
            for t in range(T):                 # static, fully unrolled recurrence
                gates = xp[t]                                         # (B, 4H) f32
                if t > 0:                      # h_{-1} == 0 -> skip matmul at t=0
                    gates = gates + jnp.dot(h_bf, whh,
                                            preferred_element_type=f32)
                # Two whole-tile EUP pushes (sigmoid + tanh) instead of four
                # per-slice activations; pick the 'g' lanes with the mask.
                act = jnp.where(g_mask, jnp.tanh(gates), jax.nn.sigmoid(gates))
                i_g = act[:, 0:H]
                f_g = act[:, H:2 * H]
                g_g = act[:, 2 * H:3 * H]
                o_g = act[:, 3 * H:4 * H]
                c = i_g * g_g if t == 0 else f_g * c + i_g * g_g      # c_{-1} == 0
                h = o_g * jnp.tanh(c)
                h_bf = h.astype(bf16)
                if not last:
                    # Fused next-layer input projection: the MXU push overlaps
                    # the EUP/VPU state update of the next timestep; no
                    # stack+reshape of the hidden sequence is needed.
                    xp_next.append(
                        jnp.dot(h_bf, wih_next, preferred_element_type=f32)
                        + b_next)
            if not last:
                xp = xp_next

        # Head: softmax(linear(h_last), dim=1)[:, 0]
        #       == sigmoid(h_last @ (w0 - w1) + (b0 - b1)).
        head = p_ref[head_off:head_off + 1, :]                        # (1, 4H)
        w_diff = head[:, 0:H]                                         # (1, H)
        b_diff = head[:, H:H + 1]                                     # (1, 1)
        logit = jnp.sum(h * w_diff, axis=1, keepdims=True) + b_diff   # (B, 1)
        out_ref[...] = jax.nn.sigmoid(logit)

    return kernel


# ----------------------------------------------------------------------------
# Parameter packing: one (P, 4H) f32 slab, 8-row-aligned blocks, static offsets.
# ----------------------------------------------------------------------------
def prepare_params(params):
    layers = params["lstm_layers"]
    H = layers[0][1].shape[0]
    four_h = 4 * H

    def pad8(a):
        r = (-a.shape[0]) % 8
        if r == 0:
            return a
        return jnp.concatenate([a, jnp.zeros((r, a.shape[1]), a.dtype)], axis=0)

    blocks, layer_meta, row = [], [], 0
    for (w_ihT, w_hhT, bias_row) in layers:
        in_l = w_ihT.shape[0]
        wih_p, whh_p, b_p = pad8(w_ihT), pad8(w_hhT), pad8(bias_row)
        layer_meta.append((row, in_l,
                           row + wih_p.shape[0],
                           row + wih_p.shape[0] + whh_p.shape[0]))
        blocks += [wih_p, whh_p, b_p]
        row += wih_p.shape[0] + whh_p.shape[0] + b_p.shape[0]

    # Head folded to a difference vector (valid because the linear layer has
    # exactly 2 outputs): softmax(..)[:, 0] == sigmoid(h @ (w0-w1) + (b0-b1)).
    w_diff = params["w_linT"][:, 0] - params["w_linT"][:, 1]          # (H,)
    b_diff = params["b_lin"][0, 0] - params["b_lin"][0, 1]
    head_row = jnp.zeros((1, four_h), jnp.float32)
    head_row = head_row.at[0, :H].set(w_diff).at[0, H].set(b_diff)
    head_off = row
    blocks.append(pad8(head_row))

    packed = jnp.concatenate(blocks, axis=0)                          # (P, 4H) f32
    meta = (len(layers), layers[0][0].shape[0], H, tuple(layer_meta), head_off)
    return packed, meta


# ----------------------------------------------------------------------------
# Model wrapper: single fused pallas_call, 2 input DMAs (x + packed params).
# ----------------------------------------------------------------------------
@functools.partial(jax.jit, static_argnames=("meta",))
def model_forward(x_bti, packed, meta):
    B, T, I = x_bti.shape
    # Time-major input so the per-timestep gate slab slice inside the kernel
    # is a contiguous sublane-aligned (B, 4H) block (tiny XLA-side transpose).
    x_tmaj = jnp.transpose(x_bti.astype(jnp.float32), (1, 0, 2)).reshape(T * B, I)

    inputs = [x_tmaj, packed]
    in_specs = [pl.BlockSpec(a.shape, lambda i, n=a.ndim: (0,) * n) for a in inputs]

    out = pl.pallas_call(
        _make_fused_kernel(meta, B, T),
        out_shape=jax.ShapeDtypeStruct((B, 1), jnp.float32),
        grid_spec=pltpu.PrefetchScalarGridSpec(
            num_scalar_prefetch=0,
            grid=(1,),
            in_specs=in_specs,
            out_specs=pl.BlockSpec((B, 1), lambda i: (0, 0)),
        ),
        compiler_params=pltpu.CompilerParams(
            dimension_semantics=("arbitrary",),
        ),
    )(*inputs)
    return out[:, 0]                                                  # (B,)


def init_params(key, input_size, hidden_size, num_layers):
    """Deterministic PyTorch-style U(-1/sqrt(H), 1/sqrt(H)) init."""
    k = 1.0 / jnp.sqrt(jnp.float32(hidden_size))
    layers = []
    for layer in range(num_layers):
        in_sz = input_size if layer == 0 else hidden_size
        key, k1, k2, k3, k4 = jax.random.split(key, 5)
        w_ihT = jax.random.uniform(k1, (in_sz, 4 * hidden_size), jnp.float32, -k, k)
        w_hhT = jax.random.uniform(k2, (hidden_size, 4 * hidden_size), jnp.float32, -k, k)
        b_ih = jax.random.uniform(k3, (4 * hidden_size,), jnp.float32, -k, k)
        b_hh = jax.random.uniform(k4, (4 * hidden_size,), jnp.float32, -k, k)
        layers.append((w_ihT, w_hhT, (b_ih + b_hh).reshape(1, 4 * hidden_size)))
    key, k5, k6 = jax.random.split(key, 3)
    w_linT = jax.random.uniform(k5, (hidden_size, 2), jnp.float32, -k, k)
    b_lin = jax.random.uniform(k6, (1, 2), jnp.float32, -k, k)
    return {"lstm_layers": layers, "w_linT": w_linT, "b_lin": b_lin}


# ----------------------------------------------------------------------------
# Pure-JAX references (sanity check only).
#   matmul_dtype=f32  : strict PyTorch-f32 semantics.
#   matmul_dtype=bf16 : matches the kernel's bf16 MXU operands exactly.
# ----------------------------------------------------------------------------
def ref_forward(x_bti, params, matmul_dtype=jnp.float32):
    def mm(a, b):
        return jnp.dot(a.astype(matmul_dtype), b.astype(matmul_dtype),
                       preferred_element_type=jnp.float32)

    x = jnp.transpose(x_bti.astype(jnp.float32), (1, 0, 2))           # (T, B, I)
    for (w_ihT, w_hhT, bias) in params["lstm_layers"]:
        H = w_hhT.shape[0]
        B = x.shape[1]

        def step(carry, x_t):
            h, c = carry
            gates = mm(x_t, w_ihT) + mm(h, w_hhT) + bias
            i = jax.nn.sigmoid(gates[:, :H])
            f = jax.nn.sigmoid(gates[:, H:2 * H])
            g = jnp.tanh(gates[:, 2 * H:3 * H])
            o = jax.nn.sigmoid(gates[:, 3 * H:])
            c = f * c + i * g
            h = o * jnp.tanh(c)
            return (h, c), h

        (_, _), hs = jax.lax.scan(
            step, (jnp.zeros((B, H), jnp.float32), jnp.zeros((B, H), jnp.float32)), x
        )
        x = hs
    h_last = x[-1]
    logits = h_last @ params["w_linT"] + params["b_lin"]
    return jax.nn.softmax(logits, axis=1)[:, 0]


if __name__ == "__main__":
    batch_size = 8
    seq_len = 8
    input_size = 16
    hidden_size = 32
    num_layers = 2

    key = jax.random.PRNGKey(0)
    key, xk = jax.random.split(key)
    x = jax.random.normal(xk, (batch_size, seq_len, input_size), jnp.float32)

    params = init_params(key, input_size, hidden_size, num_layers)
    packed, meta = prepare_params(params)

    pred = jax.block_until_ready(model_forward(x, packed, meta=meta))
    assert pred.shape == (batch_size,)

    # Tight check: kernel math vs a reference using the same bf16 matmul
    # operands (validates the fused-kernel implementation itself).
    ref_bf16 = jax.block_until_ready(
        ref_forward(x, params, matmul_dtype=jnp.bfloat16))
    assert jnp.allclose(pred, ref_bf16, atol=1e-3, rtol=1e-3), (pred, ref_bf16)

    # Loose check: quantifies the (small, ~1e-3-scale) drift that bf16 MXU
    # operands introduce over the 16-step recurrence vs strict f32 semantics.
    ref_f32 = jax.block_until_ready(
        ref_forward(x, params, matmul_dtype=jnp.float32))
    assert jnp.allclose(pred, ref_f32, atol=1e-2, rtol=1e-2), (pred, ref_f32)

    print("KERNEL_OK")
</pallas_src>

<mosaic_0001>
module attributes {stable_mosaic.version = 11 : i64} {
  func.func @kernel(%arg0: i32, %arg1: memref<64x16xf32, #tpu.memory_space<vmem>>, %arg2: memref<136x128xf32, #tpu.memory_space<vmem>>, %arg3: memref<8x1xf32, #tpu.memory_space<vmem>>) attributes {dimension_semantics = [#tpu.dimension_semantics<arbitrary>], iteration_bounds = array<i64: 1>, scalar_prefetch = 0 : i64, scratch_operands = 0 : i64, tpu.core_type = #tpu.core_type<tc>, window_params = [{pipeline_mode = #tpu.pipeline_mode<synchronous>, transform_indices = @transform_0, window_bounds = array<i64: 64, 16>}, {pipeline_mode = #tpu.pipeline_mode<synchronous>, transform_indices = @transform_1, window_bounds = array<i64: 136, 128>}, {pipeline_mode = #tpu.pipeline_mode<synchronous>, transform_indices = @transform_2, window_bounds = array<i64: 8, 1>}]} {
    %0 = tpu.iota {dimensions = array<i32: 1>} : vector<8x128xi32>
    %c64_i32 = arith.constant 64 : i32
    %1 = vector.broadcast %c64_i32 : i32 to vector<8x128xi32>
    %2 = arith.cmpi sge, %0, %1 : vector<8x128xi32>
    %c96_i32 = arith.constant 96 : i32
    %3 = vector.broadcast %c96_i32 : i32 to vector<8x128xi32>
    %4 = arith.cmpi slt, %0, %3 : vector<8x128xi32>
    %5 = arith.andi %2, %4 : vector<8x128xi1>
    %c0 = arith.constant 0 : index
    %c0_0 = arith.constant 0 : index
    %6 = vector.load %arg2[%c0, %c0_0] : memref<136x128xf32, #tpu.memory_space<vmem>>, vector<16x128xf32>
    %7 = arith.truncf %6 : vector<16x128xf32> to vector<16x128xbf16>
    %c48 = arith.constant 48 : index
    %c0_1 = arith.constant 0 : index
    %8 = vector.load %arg2[%c48, %c0_1] : memref<136x128xf32, #tpu.memory_space<vmem>>, vector<1x128xf32>
    %c0_2 = arith.constant 0 : index
    %c0_3 = arith.constant 0 : index
    %9 = vector.load %arg1[%c0_2, %c0_3] : memref<64x16xf32, #tpu.memory_space<vmem>>, vector<64x16xf32>
    %10 = arith.truncf %9 : vector<64x16xf32> to vector<64x16xbf16>
    %cst = arith.constant dense<0.000000e+00> : vector<64x128xf32>
    %11 = tpu.matmul %10, %7, %cst {dimension_numbers = #tpu.dot_dimension_numbers<[1], [0], [0], [1], [0, 0, 1, 1], [], []>} : vector<64x16xbf16>, vector<16x128xbf16>, vector<64x128xf32> -> vector<64x128xf32>
    %12 = vector.broadcast %8 : vector<1x128xf32> to vector<64x128xf32>
    %13 = arith.addf %11, %12 : vector<64x128xf32>
    %14 = vector.extract_strided_slice %13 {offsets = [0, 0], sizes = [8, 128], strides = [1, 1]} : vector<64x128xf32> to vector<8x128xf32>
    %15 = vector.extract_strided_slice %13 {offsets = [8, 0], sizes = [8, 128], strides = [1, 1]} : vector<64x128xf32> to vector<8x128xf32>
    %16 = vector.extract_strided_slice %13 {offsets = [16, 0], sizes = [8, 128], strides = [1, 1]} : vector<64x128xf32> to vector<8x128xf32>
    %17 = vector.extract_strided_slice %13 {offsets = [24, 0], sizes = [8, 128], strides = [1, 1]} : vector<64x128xf32> to vector<8x128xf32>
    %18 = vector.extract_strided_slice %13 {offsets = [32, 0], sizes = [8, 128], strides = [1, 1]} : vector<64x128xf32> to vector<8x128xf32>
    %19 = vector.extract_strided_slice %13 {offsets = [40, 0], sizes = [8, 128], strides = [1, 1]} : vector<64x128xf32> to vector<8x128xf32>
    %20 = vector.extract_strided_slice %13 {offsets = [48, 0], sizes = [8, 128], strides = [1, 1]} : vector<64x128xf32> to vector<8x128xf32>
    %21 = vector.extract_strided_slice %13 {offsets = [56, 0], sizes = [8, 128], strides = [1, 1]} : vector<64x128xf32> to vector<8x128xf32>
    %c16 = arith.constant 16 : index
    %c0_4 = arith.constant 0 : index
    %22 = vector.load %arg2[%c16, %c0_4] : memref<136x128xf32, #tpu.memory_space<vmem>>, vector<32x128xf32>
    %23 = arith.truncf %22 : vector<32x128xf32> to vector<32x128xbf16>
    %c56 = arith.constant 56 : index
    %c0_5 = arith.constant 0 : index
    %24 = vector.load %arg2[%c56, %c0_5] : memref<136x128xf32, #tpu.memory_space<vmem>>, vector<32x128xf32>
    %25 = arith.truncf %24 : vector<32x128xf32> to vector<32x128xbf16>
    %c120 = arith.constant 120 : index
    %c0_6 = arith.constant 0 : index
    %26 = vector.load %arg2[%c120, %c0_6] : memref<136x128xf32, #tpu.memory_space<vmem>>, vector<1x128xf32>
    %27 = math.tanh %14 : vector<8x128xf32>
    %28 = arith.negf %14 : vector<8x128xf32>
    %29 = math.exp %28 : vector<8x128xf32>
    %cst_7 = arith.constant 1.000000e+00 : f32
    %30 = vector.broadcast %cst_7 : f32 to vector<8x128xf32>
    %31 = arith.addf %30, %29 : vector<8x128xf32>
    %32 = arith.divf %30, %31 : vector<8x128xf32>
    %33 = arith.select %5, %27, %32 : vector<8x128xi1>, vector<8x128xf32>
    %34 = vector.extract_strided_slice %33 {offsets = [0, 0], sizes = [8, 32], strides = [1, 1]} : vector<8x128xf32> to vector<8x32xf32>
    %35 = vector.extract_strided_slice %33 {offsets = [0, 64], sizes = [8, 32], strides = [1, 1]} : vector<8x128xf32> to vector<8x32xf32>
    %36 = vector.extract_strided_slice %33 {offsets = [0, 96], sizes = [8, 32], strides = [1, 1]} : vector<8x128xf32> to vector<8x32xf32>
    %37 = arith.mulf %34, %35 : vector<8x32xf32>
    %38 = math.tanh %37 : vector<8x32xf32>
    %39 = arith.mulf %36, %38 : vector<8x32xf32>
    %40 = arith.truncf %39 : vector<8x32xf32> to vector<8x32xbf16>
    %cst_8 = arith.constant dense<0.000000e+00> : vector<8x128xf32>
    %41 = tpu.matmul %40, %25, %cst_8 {dimension_numbers = #tpu.dot_dimension_numbers<[1], [0], [0], [1], [0, 0, 1, 1], [], []>} : vector<8x32xbf16>, vector<32x128xbf16>, vector<8x128xf32> -> vector<8x128xf32>
    %42 = vector.broadcast %26 : vector<1x128xf32> to vector<8x128xf32>
    %43 = arith.addf %41, %42 : vector<8x128xf32>
    %cst_9 = arith.constant dense<0.000000e+00> : vector<8x128xf32>
    %44 = tpu.matmul %40, %23, %cst_9 {dimension_numbers = #tpu.dot_dimension_numbers<[1], [0], [0], [1], [0, 0, 1, 1], [], []>} : vector<8x32xbf16>, vector<32x128xbf16>, vector<8x128xf32> -> vector<8x128xf32>
    %45 = arith.addf %15, %44 : vector<8x128xf32>
    %46 = math.tanh %45 : vector<8x128xf32>
    %47 = arith.negf %45 : vector<8x128xf32>
    %48 = math.exp %47 : vector<8x128xf32>
    %cst_10 = arith.constant 1.000000e+00 : f32
    %49 = vector.broadcast %cst_10 : f32 to vector<8x128xf32>
    %50 = arith.addf %49, %48 : vector<8x128xf32>
    %51 = arith.divf %49, %50 : vector<8x128xf32>
    %52 = arith.select %5, %46, %51 : vector<8x128xi1>, vector<8x128xf32>
    %53 = vector.extract_strided_slice %52 {offsets = [0, 0], sizes = [8, 32], strides = [1, 1]} : vector<8x128xf32> to vector<8x32xf32>
    %54 = vector.extract_strided_slice %52 {offsets = [0, 32], sizes = [8, 32], strides = [1, 1]} : vector<8x128xf32> to vector<8x32xf32>
    %55 = vector.extract_strided_slice %52 {offsets = [0, 64], sizes = [8, 32], strides = [1, 1]} : vector<8x128xf32> to vector<8x32xf32>
    %56 = vector.extract_strided_slice %52 {offsets = [0, 96], sizes = [8, 32], strides = [1, 1]} : vector<8x128xf32> to vector<8x32xf32>
    %57 = arith.mulf %54, %37 : vector<8x32xf32>
    %58 = arith.mulf %53, %55 : vector<8x32xf32>
    %59 = arith.addf %57, %58 : vector<8x32xf32>
    %60 = math.tanh %59 : vector<8x32xf32>
    %61 = arith.mulf %56, %60 : vector<8x32xf32>
    %62 = arith.truncf %61 : vector<8x32xf32> to vector<8x32xbf16>
    %cst_11 = arith.constant dense<0.000000e+00> : vector<8x128xf32>
    %63 = tpu.matmul %62, %25, %cst_11 {dimension_numbers = #tpu.dot_dimension_numbers<[1], [0], [0], [1], [0, 0, 1, 1], [], []>} : vector<8x32xbf16>, vector<32x128xbf16>, vector<8x128xf32> -> vector<8x128xf32>
    %64 = vector.broadcast %26 : vector<1x128xf32> to vector<8x128xf32>
    %65 = arith.addf %63, %64 : vector<8x128xf32>
    %cst_12 = arith.constant dense<0.000000e+00> : vector<8x128xf32>
    %66 = tpu.matmul %62, %23, %cst_12 {dimension_numbers = #tpu.dot_dimension_numbers<[1], [0], [0], [1], [0, 0, 1, 1], [], []>} : vector<8x32xbf16>, vector<32x128xbf16>, vector<8x128xf32> -> vector<8x128xf32>
    %67 = arith.addf %16, %66 : vector<8x128xf32>
    %68 = math.tanh %67 : vector<8x128xf32>
    %69 = arith.negf %67 : vector<8x128xf32>
    %70 = math.exp %69 : vector<8x128xf32>
    %cst_13 = arith.constant 1.000000e+00 : f32
    %71 = vector.broadcast %cst_13 : f32 to vector<8x128xf32>
    %72 = arith.addf %71, %70 : vector<8x128xf32>
    %73 = arith.divf %71, %72 : vector<8x128xf32>
    %74 = arith.select %5, %68, %73 : vector<8x128xi1>, vector<8x128xf32>
    %75 = vector.extract_strided_slice %74 {offsets = [0, 0], sizes = [8, 32], strides = [1, 1]} : vector<8x128xf32> to vector<8x32xf32>
    %76 = vector.extract_strided_slice %74 {offsets = [0, 32], sizes = [8, 32], strides = [1, 1]} : vector<8x128xf32> to vector<8x32xf32>
    %77 = vector.extract_strided_slice %74 {offsets = [0, 64], sizes = [8, 32], strides = [1, 1]} : vector<8x128xf32> to vector<8x32xf32>
    %78 = vector.extract_strided_slice %74 {offsets = [0, 96], sizes = [8, 32], strides = [1, 1]} : vector<8x128xf32> to vector<8x32xf32>
    %79 = arith.mulf %76, %59 : vector<8x32xf32>
    %80 = arith.mulf %75, %77 : vector<8x32xf32>
    %81 = arith.addf %79, %80 : vector<8x32xf32>
    %82 = math.tanh %81 : vector<8x32xf32>
    %83 = arith.mulf %78, %82 : vector<8x32xf32>
    %84 = arith.truncf %83 : vector<8x32xf32> to vector<8x32xbf16>
    %cst_14 = arith.constant dense<0.000000e+00> : vector<8x128xf32>
    %85 = tpu.matmul %84, %25, %cst_14 {dimension_numbers = #tpu.dot_dimension_numbers<[1], [0], [0], [1], [0, 0, 1, 1], [], []>} : vector<8x32xbf16>, vector<32x128xbf16>, vector<8x128xf32> -> vector<8x128xf32>
    %86 = vector.broadcast %26 : vector<1x128xf32> to vector<8x128xf32>
    %87 = arith.addf %85, %86 : vector<8x128xf32>
    %cst_15 = arith.constant dense<0.000000e+00> : vector<8x128xf32>
    %88 = tpu.matmul %84, %23, %cst_15 {dimension_numbers = #tpu.dot_dimension_numbers<[1], [0], [0], [1], [0, 0, 1, 1], [], []>} : vector<8x32xbf16>, vector<32x128xbf16>, vector<8x128xf32> -> vector<8x128xf32>
    %89 = arith.addf %17, %88 : vector<8x128xf32>
    %90 = math.tanh %89 : vector<8x128xf32>
    %91 = arith.negf %89 : vector<8x128xf32>
    %92 = math.exp %91 : vector<8x128xf32>
    %cst_16 = arith.constant 1.000000e+00 : f32
    %93 = vector.broadcast %cst_16 : f32 to vector<8x128xf32>
    %94 = arith.addf %93, %92 : vector<8x128xf32>
    %95 = arith.divf %93, %94 : vector<8x128xf32>
    %96 = arith.select %5, %90, %95 : vector<8x128xi1>, vector<8x128xf32>
    %97 = vector.extract_strided_slice %96 {offsets = [0, 0], sizes = [8, 32], strides = [1, 1]} : vector<8x128xf32> to vector<8x32xf32>
    %98 = vector.extract_strided_slice %96 {offsets = [0, 32], sizes = [8, 32], strides = [1, 1]} : vector<8x128xf32> to vector<8x32xf32>
    %99 = vector.extract_strided_slice %96 {offsets = [0, 64], sizes = [8, 32], strides = [1, 1]} : vector<8x128xf32> to vector<8x32xf32>
    %100 = vector.extract_strided_slice %96 {offsets = [0, 96], sizes = [8, 32], strides = [1, 1]} : vector<8x128xf32> to vector<8x32xf32>
    %101 = arith.mulf %98, %81 : vector<8x32xf32>
    %102 = arith.mulf %97, %99 : vector<8x32xf32>
    %103 = arith.addf %101, %102 : vector<8x32xf32>
    %104 = math.tanh %103 : vector<8x32xf32>
    %105 = arith.mulf %100, %104 : vector<8x32xf32>
    %106 = arith.truncf %105 : vector<8x32xf32> to vector<8x32xbf16>
    %cst_17 = arith.constant dense<0.000000e+00> : vector<8x128xf32>
    %107 = tpu.matmul %106, %25, %cst_17 {dimension_numbers = #tpu.dot_dimension_numbers<[1], [0], [0], [1], [0, 0, 1, 1], [], []>} : vector<8x32xbf16>, vector<32x128xbf16>, vector<8x128xf32> -> vector<8x128xf32>
    %108 = vector.broadcast %26 : vector<1x128xf32> to vector<8x128xf32>
    %109 = arith.addf %107, %108 : vector<8x128xf32>
    %cst_18 = arith.constant dense<0.000000e+00> : vector<8x128xf32>
    %110 = tpu.matmul %106, %23, %cst_18 {dimension_numbers = #tpu.dot_dimension_numbers<[1], [0], [0], [1], [0, 0, 1, 1], [], []>} : vector<8x32xbf16>, vector<32x128xbf16>, vector<8x128xf32> -> vector<8x128xf32>
    %111 = arith.addf %18, %110 : vector<8x128xf32>
    %112 = math.tanh %111 : vector<8x128xf32>
    %113 = arith.negf %111 : vector<8x128xf32>
    %114 = math.exp %113 : vector<8x128xf32>
    %cst_19 = arith.constant 1.000000e+00 : f32
    %115 = vector.broadcast %cst_19 : f32 to vector<8x128xf32>
    %116 = arith.addf %115, %114 : vector<8x128xf32>
    %117 = arith.divf %115, %116 : vector<8x128xf32>
    %118 = arith.select %5, %112, %117 : vector<8x128xi1>, vector<8x128xf32>
    %119 = vector.extract_strided_slice %118 {offsets = [0, 0], sizes = [8, 32], strides = [1, 1]} : vector<8x128xf32> to vector<8x32xf32>
    %120 = vector.extract_strided_slice %118 {offsets = [0, 32], sizes = [8, 32], strides = [1, 1]} : vector<8x128xf32> to vector<8x32xf32>
    %121 = vector.extract_strided_slice %118 {offsets = [0, 64], sizes = [8, 32], strides = [1, 1]} : vector<8x128xf32> to vector<8x32xf32>
    %122 = vector.extract_strided_slice %118 {offsets = [0, 96], sizes = [8, 32], strides = [1, 1]} : vector<8x128xf32> to vector<8x32xf32>
    %123 = arith.mulf %120, %103 : vector<8x32xf32>
    %124 = arith.mulf %119, %121 : vector<8x32xf32>
    %125 = arith.addf %123, %124 : vector<8x32xf32>
    %126 = math.tanh %125 : vector<8x32xf32>
    %127 = arith.mulf %122, %126 : vector<8x32xf32>
    %128 = arith.truncf %127 : vector<8x32xf32> to vector<8x32xbf16>
    %cst_20 = arith.constant dense<0.000000e+00> : vector<8x128xf32>
    %129 = tpu.matmul %128, %25, %cst_20 {dimension_numbers = #tpu.dot_dimension_numbers<[1], [0], [0], [1], [0, 0, 1, 1], [], []>} : vector<8x32xbf16>, vector<32x128xbf16>, vector<8x128xf32> -> vector<8x128xf32>
    %130 = vector.broadcast %26 : vector<1x128xf32> to vector<8x128xf32>
    %131 = arith.addf %129, %130 : vector<8x128xf32>
    %cst_21 = arith.constant dense<0.000000e+00> : vector<8x128xf32>
    %132 = tpu.matmul %128, %23, %cst_21 {dimension_numbers = #tpu.dot_dimension_numbers<[1], [0], [0], [1], [0, 0, 1, 1], [], []>} : vector<8x32xbf16>, vector<32x128xbf16>, vector<8x128xf32> -> vector<8x128xf32>
    %133 = arith.addf %19, %132 : vector<8x128xf32>
    %134 = math.tanh %133 : vector<8x128xf32>
    %135 = arith.negf %133 : vector<8x128xf32>
    %136 = math.exp %135 : vector<8x128xf32>
    %cst_22 = arith.constant 1.000000e+00 : f32
    %137 = vector.broadcast %cst_22 : f32 to vector<8x128xf32>
    %138 = arith.addf %137, %136 : vector<8x128xf32>
    %139 = arith.divf %137, %138 : vector<8x128xf32>
    %140 = arith.select %5, %134, %139 : vector<8x128xi1>, vector<8x128xf32>
    %141 = vector.extract_strided_slice %140 {offsets = [0, 0], sizes = [8, 32], strides = [1, 1]} : vector<8x128xf32> to vector<8x32xf32>
    %142 = vector.extract_strided_slice %140 {offsets = [0, 32], sizes = [8, 32], strides = [1, 1]} : vector<8x128xf32> to vector<8x32xf32>
    %143 = vector.extract_strided_slice %140 {offsets = [0, 64], sizes = [8, 32], strides = [1, 1]} : vector<8x128xf32> to vector<8x32xf32>
    %144 = vector.extract_strided_slice %140 {offsets = [0, 96], sizes = [8, 32], strides = [1, 1]} : vector<8x128xf32> to vector<8x32xf32>
    %145 = arith.mulf %142, %125 : vector<8x32xf32>
    %146 = arith.mulf %141, %143 : vector<8x32xf32>
    %147 = arith.addf %145, %146 : vector<8x32xf32>
    %148 = math.tanh %147 : vector<8x32xf32>
    %149 = arith.mulf %144, %148 : vector<8x32xf32>
    %150 = arith.truncf %149 : vector<8x32xf32> to vector<8x32xbf16>
    %cst_23 = arith.constant dense<0.000000e+00> : vector<8x128xf32>
    %151 = tpu.matmul %150, %25, %cst_23 {dimension_numbers = #tpu.dot_dimension_numbers<[1], [0], [0], [1], [0, 0, 1, 1], [], []>} : vector<8x32xbf16>, vector<32x128xbf16>, vector<8x128xf32> -> vector<8x128xf32>
    %152 = vector.broadcast %26 : vector<1x128xf32> to vector<8x128xf32>
    %153 = arith.addf %151, %152 : vector<8x128xf32>
    %cst_24 = arith.constant dense<0.000000e+00> : vector<8x128xf32>
    %154 = tpu.matmul %150, %23, %cst_24 {dimension_numbers = #tpu.dot_dimension_numbers<[1], [0], [0], [1], [0, 0, 1, 1], [], []>} : vector<8x32xbf16>, vector<32x128xbf16>, vector<8x128xf32> -> vector<8x128xf32>
    %155 = arith.addf %20, %154 : vector<8x128xf32>
    %156 = math.tanh %155 : vector<8x128xf32>
    %157 = arith.negf %155 : vector<8x128xf32>
    %158 = math.exp %157 : vector<8x128xf32>
    %cst_25 = arith.constant 1.000000e+00 : f32
    %159 = vector.broadcast %cst_25 : f32 to vector<8x128xf32>
    %160 = arith.addf %159, %158 : vector<8x128xf32>
    %161 = arith.divf %159, %160 : vector<8x128xf32>
    %162 = arith.select %5, %156, %161 : vector<8x128xi1>, vector<8x128xf32>
    %163 = vector.extract_strided_slice %162 {offsets = [0, 0], sizes = [8, 32], strides = [1, 1]} : vector<8x128xf32> to vector<8x32xf32>
    %164 = vector.extract_strided_slice %162 {offsets = [0, 32], sizes = [8, 32], strides = [1, 1]} : vector<8x128xf32> to vector<8x32xf32>
    %165 = vector.extract_strided_slice %162 {offsets = [0, 64], sizes = [8, 32], strides = [1, 1]} : vector<8x128xf32> to vector<8x32xf32>
    %166 = vector.extract_strided_slice %162 {offsets = [0, 96], sizes = [8, 32], strides = [1, 1]} : vector<8x128xf32> to vector<8x32xf32>
    %167 = arith.mulf %164, %147 : vector<8x32xf32>
    %168 = arith.mulf %163, %165 : vector<8x32xf32>
    %169 = arith.addf %167, %168 : vector<8x32xf32>
    %170 = math.tanh %169 : vector<8x32xf32>
    %171 = arith.mulf %166, %170 : vector<8x32xf32>
    %172 = arith.truncf %171 : vector<8x32xf32> to vector<8x32xbf16>
    %cst_26 = arith.constant dense<0.000000e+00> : vector<8x128xf32>
    %173 = tpu.matmul %172, %25, %cst_26 {dimension_numbers = #tpu.dot_dimension_numbers<[1], [0], [0], [1], [0, 0, 1, 1], [], []>} : vector<8x32xbf16>, vector<32x128xbf16>, vector<8x128xf32> -> vector<8x128xf32>
    %174 = vector.broadcast %26 : vector<1x128xf32> to vector<8x128xf32>
    %175 = arith.addf %173, %174 : vector<8x128xf32>
    %cst_27 = arith.constant dense<0.000000e+00> : vector<8x128xf32>
    %176 = tpu.matmul %172, %23, %cst_27 {dimension_numbers = #tpu.dot_dimension_numbers<[1], [0], [0], [1], [0, 0, 1, 1], [], []>} : vector<8x32xbf16>, vector<32x128xbf16>, vector<8x128xf32> -> vector<8x128xf32>
    %177 = arith.addf %21, %176 : vector<8x128xf32>
    %178 = math.tanh %177 : vector<8x128xf32>
    %179 = arith.negf %177 : vector<8x128xf32>
    %180 = math.exp %179 : vector<8x128xf32>
    %cst_28 = arith.constant 1.000000e+00 : f32
    %181 = vector.broadcast %cst_28 : f32 to vector<8x128xf32>
    %182 = arith.addf %181, %180 : vector<8x128xf32>
    %183 = arith.divf %181, %182 : vector<8x128xf32>
    %184 = arith.select %5, %178, %183 : vector<8x128xi1>, vector<8x128xf32>
    %185 = vector.extract_strided_slice %184 {offsets = [0, 0], sizes = [8, 32], strides = [1, 1]} : vector<8x128xf32> to vector<8x32xf32>
    %186 = vector.extract_strided_slice %184 {offsets = [0, 32], sizes = [8, 32], strides = [1, 1]} : vector<8x128xf32> to vector<8x32xf32>
    %187 = vector.extract_strided_slice %184 {offsets = [0, 64], sizes = [8, 32], strides = [1, 1]} : vector<8x128xf32> to vector<8x32xf32>
    %188 = vector.extract_strided_slice %184 {offsets = [0, 96], sizes = [8, 32], strides = [1, 1]} : vector<8x128xf32> to vector<8x32xf32>
    %189 = arith.mulf %186, %169 : vector<8x32xf32>
    %190 = arith.mulf %185, %187 : vector<8x32xf32>
    %191 = arith.addf %189, %190 : vector<8x32xf32>
    %192 = math.tanh %191 : vector<8x32xf32>
    %193 = arith.mulf %188, %192 : vector<8x32xf32>
    %194 = arith.truncf %193 : vector<8x32xf32> to vector<8x32xbf16>
    %cst_29 = arith.constant dense<0.000000e+00> : vector<8x128xf32>
    %195 = tpu.matmul %194, %25, %cst_29 {dimension_numbers = #tpu.dot_dimension_numbers<[1], [0], [0], [1], [0, 0, 1, 1], [], []>} : vector<8x32xbf16>, vector<32x128xbf16>, vector<8x128xf32> -> vector<8x128xf32>
    %196 = vector.broadcast %26 : vector<1x128xf32> to vector<8x128xf32>
    %197 = arith.addf %195, %196 : vector<8x128xf32>
    %c88 = arith.constant 88 : index
    %c0_30 = arith.constant 0 : index
    %198 = vector.load %arg2[%c88, %c0_30] : memref<136x128xf32, #tpu.memory_space<vmem>>, vector<32x128xf32>
    %199 = arith.truncf %198 : vector<32x128xf32> to vector<32x128xbf16>
    %200 = math.tanh %43 : vector<8x128xf32>
    %201 = arith.negf %43 : vector<8x128xf32>
    %202 = math.exp %201 : vector<8x128xf32>
    %cst_31 = arith.constant 1.000000e+00 : f32
    %203 = vector.broadcast %cst_31 : f32 to vector<8x128xf32>
    %204 = arith.addf %203, %202 : vector<8x128xf32>
    %205 = arith.divf %203, %204 : vector<8x128xf32>
    %206 = arith.select %5, %200, %205 : vector<8x128xi1>, vector<8x128xf32>
    %207 = vector.extract_strided_slice %206 {offsets = [0, 0], sizes = [8, 32], strides = [1, 1]} : vector<8x128xf32> to vector<8x32xf32>
    %208 = vector.extract_strided_slice %206 {offsets = [0, 64], sizes = [8, 32], strides = [1, 1]} : vector<8x128xf32> to vector<8x32xf32>
    %209 = vector.extract_strided_slice %206 {offsets = [0, 96], sizes = [8, 32], strides = [1, 1]} : vector<8x128xf32> to vector<8x32xf32>
    %210 = arith.mulf %207, %208 : vector<8x32xf32>
    %211 = math.tanh %210 : vector<8x32xf32>
    %212 = arith.mulf %209, %211 : vector<8x32xf32>
    %213 = arith.truncf %212 : vector<8x32xf32> to vector<8x32xbf16>
    %cst_32 = arith.constant dense<0.000000e+00> : vector<8x128xf32>
    %214 = tpu.matmul %213, %199, %cst_32 {dimension_numbers = #tpu.dot_dimension_numbers<[1], [0], [0], [1], [0, 0, 1, 1], [], []>} : vector<8x32xbf16>, vector<32x128xbf16>, vector<8x128xf32> -> vector<8x128xf32>
    %215 = arith.addf %65, %214 : vector<8x128xf32>
    %216 = math.tanh %215 : vector<8x128xf32>
    %217 = arith.negf %215 : vector<8x128xf32>
    %218 = math.exp %217 : vector<8x128xf32>
    %cst_33 = arith.constant 1.000000e+00 : f32
    %219 = vector.broadcast %cst_33 : f32 to vector<8x128xf32>
    %220 = arith.addf %219, %218 : vector<8x128xf32>
    %221 = arith.divf %219, %220 : vector<8x128xf32>
    %222 = arith.select %5, %216, %221 : vector<8x128xi1>, vector<8x128xf32>
    %223 = vector.extract_strided_slice %222 {offsets = [0, 0], sizes = [8, 32], strides = [1, 1]} : vector<8x128xf32> to vector<8x32xf32>
    %224 = vector.extract_strided_slice %222 {offsets = [0, 32], sizes = [8, 32], strides = [1, 1]} : vector<8x128xf32> to vector<8x32xf32>
    %225 = vector.extract_strided_slice %222 {offsets = [0, 64], sizes = [8, 32], strides = [1, 1]} : vector<8x128xf32> to vector<8x32xf32>
    %226 = vector.extract_strided_slice %222 {offsets = [0, 96], sizes = [8, 32], strides = [1, 1]} : vector<8x128xf32> to vector<8x32xf32>
    %227 = arith.mulf %224, %210 : vector<8x32xf32>
    %228 = arith.mulf %223, %225 : vector<8x32xf32>
    %229 = arith.addf %227, %228 : vector<8x32xf32>
    %230 = math.tanh %229 : vector<8x32xf32>
    %231 = arith.mulf %226, %230 : vector<8x32xf32>
    %232 = arith.truncf %231 : vector<8x32xf32> to vector<8x32xbf16>
    %cst_34 = arith.constant dense<0.000000e+00> : vector<8x128xf32>
    %233 = tpu.matmul %232, %199, %cst_34 {dimension_numbers = #tpu.dot_dimension_numbers<[1], [0], [0], [1], [0, 0, 1, 1], [], []>} : vector<8x32xbf16>, vector<32x128xbf16>, vector<8x128xf32> -> vector<8x128xf32>
    %234 = arith.addf %87, %233 : vector<8x128xf32>
    %235 = math.tanh %234 : vector<8x128xf32>
    %236 = arith.negf %234 : vector<8x128xf32>
    %237 = math.exp %236 : vector<8x128xf32>
    %cst_35 = arith.constant 1.000000e+00 : f32
    %238 = vector.broadcast %cst_35 : f32 to vector<8x128xf32>
    %239 = arith.addf %238, %237 : vector<8x128xf32>
    %240 = arith.divf %238, %239 : vector<8x128xf32>
    %241 = arith.select %5, %235, %240 : vector<8x128xi1>, vector<8x128xf32>
    %242 = vector.extract_strided_slice %241 {offsets = [0, 0], sizes = [8, 32], strides = [1, 1]} : vector<8x128xf32> to vector<8x32xf32>
    %243 = vector.extract_strided_slice %241 {offsets = [0, 32], sizes = [8, 32], strides = [1, 1]} : vector<8x128xf32> to vector<8x32xf32>
    %244 = vector.extract_strided_slice %241 {offsets = [0, 64], sizes = [8, 32], strides = [1, 1]} : vector<8x128xf32> to vector<8x32xf32>
    %245 = vector.extract_strided_slice %241 {offsets = [0, 96], sizes = [8, 32], strides = [1, 1]} : vector<8x128xf32> to vector<8x32xf32>
    %246 = arith.mulf %243, %229 : vector<8x32xf32>
    %247 = arith.mulf %242, %244 : vector<8x32xf32>
    %248 = arith.addf %246, %247 : vector<8x32xf32>
    %249 = math.tanh %248 : vector<8x32xf32>
    %250 = arith.mulf %245, %249 : vector<8x32xf32>
    %251 = arith.truncf %250 : vector<8x32xf32> to vector<8x32xbf16>
    %cst_36 = arith.constant dense<0.000000e+00> : vector<8x128xf32>
    %252 = tpu.matmul %251, %199, %cst_36 {dimension_numbers = #tpu.dot_dimension_numbers<[1], [0], [0], [1], [0, 0, 1, 1], [], []>} : vector<8x32xbf16>, vector<32x128xbf16>, vector<8x128xf32> -> vector<8x128xf32>
    %253 = arith.addf %109, %252 : vector<8x128xf32>
    %254 = math.tanh %253 : vector<8x128xf32>
    %255 = arith.negf %253 : vector<8x128xf32>
    %256 = math.exp %255 : vector<8x128xf32>
    %cst_37 = arith.constant 1.000000e+00 : f32
    %257 = vector.broadcast %cst_37 : f32 to vector<8x128xf32>
    %258 = arith.addf %257, %256 : vector<8x128xf32>
    %259 = arith.divf %257, %258 : vector<8x128xf32>
    %260 = arith.select %5, %254, %259 : vector<8x128xi1>, vector<8x128xf32>
    %261 = vector.extract_strided_slice %260 {offsets = [0, 0], sizes = [8, 32], strides = [1, 1]} : vector<8x128xf32> to vector<8x32xf32>
    %262 = vector.extract_strided_slice %260 {offsets = [0, 32], sizes = [8, 32], strides = [1, 1]} : vector<8x128xf32> to vector<8x32xf32>
    %263 = vector.extract_strided_slice %260 {offsets = [0, 64], sizes = [8, 32], strides = [1, 1]} : vector<8x128xf32> to vector<8x32xf32>
    %264 = vector.extract_strided_slice %260 {offsets = [0, 96], sizes = [8, 32], strides = [1, 1]} : vector<8x128xf32> to vector<8x32xf32>
    %265 = arith.mulf %262, %248 : vector<8x32xf32>
    %266 = arith.mulf %261, %263 : vector<8x32xf32>
    %267 = arith.addf %265, %266 : vector<8x32xf32>
    %268 = math.tanh %267 : vector<8x32xf32>
    %269 = arith.mulf %264, %268 : vector<8x32xf32>
    %270 = arith.truncf %269 : vector<8x32xf32> to vector<8x32xbf16>
    %cst_38 = arith.constant dense<0.000000e+00> : vector<8x128xf32>
    %271 = tpu.matmul %270, %199, %cst_38 {dimension_numbers = #tpu.dot_dimension_numbers<[1], [0], [0], [1], [0, 0, 1, 1], [], []>} : vector<8x32xbf16>, vector<32x128xbf16>, vector<8x128xf32> -> vector<8x128xf32>
    %272 = arith.addf %131, %271 : vector<8x128xf32>
    %273 = math.tanh %272 : vector<8x128xf32>
    %274 = arith.negf %272 : vector<8x128xf32>
    %275 = math.exp %274 : vector<8x128xf32>
    %cst_39 = arith.constant 1.000000e+00 : f32
    %276 = vector.broadcast %cst_39 : f32 to vector<8x128xf32>
    %277 = arith.addf %276, %275 : vector<8x128xf32>
    %278 = arith.divf %276, %277 : vector<8x128xf32>
    %279 = arith.select %5, %273, %278 : vector<8x128xi1>, vector<8x128xf32>
    %280 = vector.extract_strided_slice %279 {offsets = [0, 0], sizes = [8, 32], strides = [1, 1]} : vector<8x128xf32> to vector<8x32xf32>
    %281 = vector.extract_strided_slice %279 {offsets = [0, 32], sizes = [8, 32], strides = [1, 1]} : vector<8x128xf32> to vector<8x32xf32>
    %282 = vector.extract_strided_slice %279 {offsets = [0, 64], sizes = [8, 32], strides = [1, 1]} : vector<8x128xf32> to vector<8x32xf32>
    %283 = vector.extract_strided_slice %279 {offsets = [0, 96], sizes = [8, 32], strides = [1, 1]} : vector<8x128xf32> to vector<8x32xf32>
    %284 = arith.mulf %281, %267 : vector<8x32xf32>
    %285 = arith.mulf %280, %282 : vector<8x32xf32>
    %286 = arith.addf %284, %285 : vector<8x32xf32>
    %287 = math.tanh %286 : vector<8x32xf32>
    %288 = arith.mulf %283, %287 : vector<8x32xf32>
    %289 = arith.truncf %288 : vector<8x32xf32> to vector<8x32xbf16>
    %cst_40 = arith.constant dense<0.000000e+00> : vector<8x128xf32>
    %290 = tpu.matmul %289, %199, %cst_40 {dimension_numbers = #tpu.dot_dimension_numbers<[1], [0], [0], [1], [0, 0, 1, 1], [], []>} : vector<8x32xbf16>, vector<32x128xbf16>, vector<8x128xf32> -> vector<8x128xf32>
    %291 = arith.addf %153, %290 : vector<8x128xf32>
    %292 = math.tanh %291 : vector<8x128xf32>
    %293 = arith.negf %291 : vector<8x128xf32>
    %294 = math.exp %293 : vector<8x128xf32>
    %cst_41 = arith.constant 1.000000e+00 : f32
    %295 = vector.broadcast %cst_41 : f32 to vector<8x128xf32>
    %296 = arith.addf %295, %294 : vector<8x128xf32>
    %297 = arith.divf %295, %296 : vector<8x128xf32>
    %298 = arith.select %5, %292, %297 : vector<8x128xi1>, vector<8x128xf32>
    %299 = vector.extract_strided_slice %298 {offsets = [0, 0], sizes = [8, 32], strides = [1, 1]} : vector<8x128xf32> to vector<8x32xf32>
    %300 = vector.extract_strided_slice %298 {offsets = [0, 32], sizes = [8, 32], strides = [1, 1]} : vector<8x128xf32> to vector<8x32xf32>
    %301 = vector.extract_strided_slice %298 {offsets = [0, 64], sizes = [8, 32], strides = [1, 1]} : vector<8x128xf32> to vector<8x32xf32>
    %302 = vector.extract_strided_slice %298 {offsets = [0, 96], sizes = [8, 32], strides = [1, 1]} : vector<8x128xf32> to vector<8x32xf32>
    %303 = arith.mulf %300, %286 : vector<8x32xf32>
    %304 = arith.mulf %299, %301 : vector<8x32xf32>
    %305 = arith.addf %303, %304 : vector<8x32xf32>
    %306 = math.tanh %305 : vector<8x32xf32>
    %307 = arith.mulf %302, %306 : vector<8x32xf32>
    %308 = arith.truncf %307 : vector<8x32xf32> to vector<8x32xbf16>
    %cst_42 = arith.constant dense<0.000000e+00> : vector<8x128xf32>
    %309 = tpu.matmul %308, %199, %cst_42 {dimension_numbers = #tpu.dot_dimension_numbers<[1], [0], [0], [1], [0, 0, 1, 1], [], []>} : vector<8x32xbf16>, vector<32x128xbf16>, vector<8x128xf32> -> vector<8x128xf32>
    %310 = arith.addf %175, %309 : vector<8x128xf32>
    %311 = math.tanh %310 : vector<8x128xf32>
    %312 = arith.negf %310 : vector<8x128xf32>
    %313 = math.exp %312 : vector<8x128xf32>
    %cst_43 = arith.constant 1.000000e+00 : f32
    %314 = vector.broadcast %cst_43 : f32 to vector<8x128xf32>
    %315 = arith.addf %314, %313 : vector<8x128xf32>
    %316 = arith.divf %314, %315 : vector<8x128xf32>
    %317 = arith.select %5, %311, %316 : vector<8x128xi1>, vector<8x128xf32>
    %318 = vector.extract_strided_slice %317 {offsets = [0, 0], sizes = [8, 32], strides = [1, 1]} : vector<8x128xf32> to vector<8x32xf32>
    %319 = vector.extract_strided_slice %317 {offsets = [0, 32], sizes = [8, 32], strides = [1, 1]} : vector<8x128xf32> to vector<8x32xf32>
    %320 = vector.extract_strided_slice %317 {offsets = [0, 64], sizes = [8, 32], strides = [1, 1]} : vector<8x128xf32> to vector<8x32xf32>
    %321 = vector.extract_strided_slice %317 {offsets = [0, 96], sizes = [8, 32], strides = [1, 1]} : vector<8x128xf32> to vector<8x32xf32>
    %322 = arith.mulf %319, %305 : vector<8x32xf32>
    %323 = arith.mulf %318, %320 : vector<8x32xf32>
    %324 = arith.addf %322, %323 : vector<8x32xf32>
    %325 = math.tanh %324 : vector<8x32xf32>
    %326 = arith.mulf %321, %325 : vector<8x32xf32>
    %327 = arith.truncf %326 : vector<8x32xf32> to vector<8x32xbf16>
    %cst_44 = arith.constant dense<0.000000e+00> : vector<8x128xf32>
    %328 = tpu.matmul %327, %199, %cst_44 {dimension_numbers = #tpu.dot_dimension_numbers<[1], [0], [0], [1], [0, 0, 1, 1], [], []>} : vector<8x32xbf16>, vector<32x128xbf16>, vector<8x128xf32> -> vector<8x128xf32>
    %329 = arith.addf %197, %328 : vector<8x128xf32>
    %330 = math.tanh %329 : vector<8x128xf32>
    %331 = arith.negf %329 : vector<8x128xf32>
    %332 = math.exp %331 : vector<8x128xf32>
    %cst_45 = arith.constant 1.000000e+00 : f32
    %333 = vector.broadcast %cst_45 : f32 to vector<8x128xf32>
    %334 = arith.addf %333, %332 : vector<8x128xf32>
    %335 = arith.divf %333, %334 : vector<8x128xf32>
    %336 = arith.select %5, %330, %335 : vector<8x128xi1>, vector<8x128xf32>
    %337 = vector.extract_strided_slice %336 {offsets = [0, 0], sizes = [8, 32], strides = [1, 1]} : vector<8x128xf32> to vector<8x32xf32>
    %338 = vector.extract_strided_slice %336 {offsets = [0, 32], sizes = [8, 32], strides = [1, 1]} : vector<8x128xf32> to vector<8x32xf32>
    %339 = vector.extract_strided_slice %336 {offsets = [0, 64], sizes = [8, 32], strides = [1, 1]} : vector<8x128xf32> to vector<8x32xf32>
    %340 = vector.extract_strided_slice %336 {offsets = [0, 96], sizes = [8, 32], strides = [1, 1]} : vector<8x128xf32> to vector<8x32xf32>
    %341 = arith.mulf %338, %324 : vector<8x32xf32>
    %342 = arith.mulf %337, %339 : vector<8x32xf32>
    %343 = arith.addf %341, %342 : vector<8x32xf32>
    %344 = math.tanh %343 : vector<8x32xf32>
    %345 = arith.mulf %340, %344 : vector<8x32xf32>
    %c128 = arith.constant 128 : index
    %c0_46 = arith.constant 0 : index
    %346 = vector.load %arg2[%c128, %c0_46] : memref<136x128xf32, #tpu.memory_space<vmem>>, vector<1x128xf32>
    %347 = vector.extract_strided_slice %346 {offsets = [0, 0], sizes = [1, 32], strides = [1, 1]} : vector<1x128xf32> to vector<1x32xf32>
    %348 = vector.extract_strided_slice %346 {offsets = [0, 32], sizes = [1, 1], strides = [1, 1]} : vector<1x128xf32> to vector<1x1xf32>
    %349 = vector.broadcast %347 : vector<1x32xf32> to vector<8x32xf32>
    %350 = arith.mulf %345, %349 : vector<8x32xf32>
    %cst_47 = arith.constant dense<0.000000e+00> : vector<8xf32>
    %351 = vector.multi_reduction <add>, %350, %cst_47 [1] : vector<8x32xf32> to vector<8xf32>
    %352 = vector.shape_cast %351 : vector<8xf32> to vector<8x1xf32>
    %353 = vector.broadcast %348 : vector<1x1xf32> to vector<8x1xf32>
    %354 = arith.addf %352, %353 : vector<8x1xf32>
    %355 = arith.negf %354 : vector<8x1xf32>
    %356 = math.exp %355 : vector<8x1xf32>
    %cst_48 = arith.constant 1.000000e+00 : f32
    %357 = vector.broadcast %cst_48 : f32 to vector<8x1xf32>
    %358 = arith.addf %357, %356 : vector<8x1xf32>
    %359 = arith.divf %357, %358 : vector<8x1xf32>
    %c0_49 = arith.constant 0 : index
    %c0_50 = arith.constant 0 : index
    %360 = vector.load %arg3[%c0_49, %c0_50] : memref<8x1xf32, #tpu.memory_space<vmem>>, vector<8x1xf32>
    tpu.vector_store %arg3[%c0_49, %c0_50], %359 {strides = array<i32>} : memref<8x1xf32, #tpu.memory_space<vmem>>, vector<8x1xf32>,
    return
  }
  func.func @transform_0(%arg0: i32) -> (i32, i32) {
    %c0_i32 = arith.constant 0 : i32
    %c0_i32_0 = arith.constant 0 : i32
    %c0_i32_1 = arith.constant 0 : i32
    return %c0_i32, %c0_i32_0 : i32, i32
  }
  func.func @transform_1(%arg0: i32) -> (i32, i32) {
    %c0_i32 = arith.constant 0 : i32
    %c0_i32_0 = arith.constant 0 : i32
    %c0_i32_1 = arith.constant 0 : i32
    return %c0_i32, %c0_i32_0 : i32, i32
  }
  func.func @transform_2(%arg0: i32) -> (i32, i32) {
    %c0_i32 = arith.constant 0 : i32
    %c0_i32_0 = arith.constant 0 : i32
    %c0_i32_1 = arith.constant 0 : i32
    return %c0_i32, %c0_i32_0 : i32, i32
  }
}

</mosaic_0001>

<bundles_post_ra>
// kernel: model_forward.1
= control target key start
LH: loop header
LB: loop body
LE: loop exit
PB: predicated region body
PF: predicated region fallthrough
CT: control target
= control target key end

     0   :  { %7 = vsyncpa [#allocation3], 0  ;;  %s1377_s12 = smov [#allocation2]   ;;  %s1378_s14 = smov 128   ;;  %s1677_s0 = inlined_call_operand.vmem [shape: f32[64,16], index: 0, kind: input, shape index: {}]   ;;  %s1678_s1 = inlined_call_operand.hbm [shape: f32[136,128], index: 1, kind: input, shape index: {}]   ;;  %s1679_s2 = inlined_call_operand.vmem [shape: f32[8,1], index: 2, kind: output, shape index: {}]  }
   0x1   :  { %s14_s11 = sshll.u32 %s1678_s1, 4  ;;  %s16_s13 = sshll.u32 %s1377_s12, 4  ;;  %s15_s11 = int_to_ptr.hbm [resolvable:$true] %s14_s11  ;;  %s17_s13 = int_to_ptr.vmem [resolvable:$true] %s16_s13 }
   0x2   :  { %s1379_s15 = smov 8  }
   0x3   :  { %22 = dma.hbm_to_vmem [thread:$0]  %s15_s11, 2176, %s17_s13, [#allocation3], %s1378_s14, %s1378_s14, %s1379_s15  }
   0x4   :  { %1375 = dma.done.wait [#allocation3], 2176  }
   0x5   :  { %1376 = vsyncadd [#allocation3], 4294965120  ;;  %v33_v0 = vld [vmem:[#allocation2] sm:$0xff]  ;;  %v34_v1 = vld [vmem:[#allocation2 + $0x8] sm:$0xff]  ;;  %vm50_vm0 = vcmask 130048   ;;  %v28_v12 = vlaneseq  ;;  %s1380_s1 = smov 64  }
   0x6   :  { %v37_v2 = vld [vmem:[%s1677_s0] sm:$0xff]  ;;  %v35_v3 = vpack.c.bf16 %v34_v1, %v33_v0  ;;  %v38_v4 = vld [vmem:[%s1677_s0 + $0x8] sm:$0xff]  ;;  %v1408_v6 = vld [vmem:[#allocation2 + $0x30] ss:$0 sm:$0xff]  ;;  %s1381_s20 = smov 32   ;;  %s1382_s21 = smov 96  }
   0x7   :  { %v45_v5 = vpack.c.bf16 %v38_v4, %v37_v2  ;;  %v29_v14 = vand.u32 127, %v28_v12  ;;  %v100_v30 = vld [vmem:[#allocation2 + $0x48] sm:$0xff]  ;;  %v101_v31 = vld [vmem:[#allocation2 + $0x50] sm:$0xff]  ;;  %v94_v32 = vld [vmem:[#allocation2 + $0x20] sm:$0xff]  ;;  %vm142_vm8 = vcmask 261120  }
   0x8   :  { %70 = vmatpush.bf16.msra.mxu0 %v35_v3  ;;  %v1420_v33 = vpack.c.bf16 %v101_v31, %v100_v30  ;;  %v95_v34 = vld [vmem:[#allocation2 + $0x28] sm:$0xff]  ;;  %v98_v35 = vld [vmem:[#allocation2 + $0x38] sm:$0xff]  ;;  %v99_v36 = vld [vmem:[#allocation2 + $0x40] sm:$0xff] }
   0x9   :  { %vm30_vm1 = vcmp.ge.s32.totalorder %v29_v14, 64  ;;  %vm31_vm2 = vcmp.lt.s32.totalorder %v29_v14, 96  ;;  %v1422_v37 = vpack.c.bf16 %v95_v34, %v94_v32  ;;  %v92_v38 = vld [vmem:[#allocation2 + $0x10] sm:$0xff]  ;;  %v93_v39 = vld [vmem:[#allocation2 + $0x18] sm:$0xff]  ;;  %v1425_v40 = vpack.c.bf16 %v99_v36, %v98_v35 }
   0xa   :  { %vm1411_vm4 = vmand %vm30_vm1, %vm31_vm2  ;;  %152 = vmatpush.bf16.msra.mxu1 %v1420_v33  ;;  %228 = vmatpush.bf16.msra.mxu3 %v1420_v33  ;;  %v1429_v41 = vpack.c.bf16 %v93_v39, %v92_v38  ;;  %v39_v12 = vld [vmem:[%s1677_s0 + $0x10] sm:$0xff] }
   0xb   :  { %1167 = vmatmul.msk.bf16.vlgmr.msra.gmra.mxu0 %vm50_vm0, %v45_v5  ;;  %165 = vmatpush.bf16.msra.mxu2 %v1422_v37 }
   0xc   :  { %588 = vmatpush.bf16.msrb.mxu0 %v1420_v33 }
   0xe   :  { %153 = vmatpush.bf16.msra.mxu1 %v1425_v40  ;;  %229 = vmatpush.bf16.msra.mxu3 %v1425_v40 }
   0xf   :  { %166 = vmatpush.bf16.msra.mxu2 %v1429_v41 }
  0x10   :  { %589 = vmatpush.bf16.msrb.mxu0 %v1425_v40 }
  0x12   :  { %241 = vmatpush.bf16.msrb.mxu1 %v1422_v37  ;;  %313 = vmatpush.bf16.msrb.mxu3 %v1422_v37 }
  0x13   :  { %300 = vmatpush.bf16.msrb.mxu2 %v1420_v33 }
  0x16   :  { %242 = vmatpush.bf16.msrb.mxu1 %v1429_v41  ;;  %314 = vmatpush.bf16.msrb.mxu3 %v1429_v41 }
  0x17   :  { %301 = vmatpush.bf16.msrb.mxu2 %v1425_v40 }
  0x88   :  { %v72_v7 = vpop.f32.mrf.mxu0 }
  0x89   :  { %v73_v8 = vadd.f32 %v1408_v6, %v72_v7 }
  0x8b   :  { %v1171_v9 = vmul.f32 -1.442695, %v73_v8 }
  0x8d   :  { %1219 = vpow2.f32 %v1171_v9 }
  0x90   :  { %v74_v47 = vpop.f32.mrf.mxu0 }
  0x91   :  { %v75_v48 = vadd.f32 %v1408_v6, %v74_v47 }
  0x93   :  { %v1220_v10 = vpop.eup %1219 }
  0x94   :  { %v109_v11 = vadd.f32 1.0, %v1220_v10 }
  0x96   :  { %1221 = vrcp.f32 %v109_v11  ;;  %v121_v17 = vand.u32 2147483648, %v109_v11  ;;  %v119_v19 = vand.u32 2147483647, %v109_v11  ;;  %vm115_vm5 = vweird.f32 %v109_v11 }
  0x97   :  { %1223 = vtanh.f32 %v73_v8 }
  0x98   :  { %v122_v22 = vor.u32 1.1754944e-38, %v121_v17  ;;  %vm120_vm7 = vcmp.eq.f32.partialorder %v119_v19, 8.507059e+37 }
  0x9c   :  { %v1222_v13 = vpop.eup %1221 }
  0x9d   :  { %v111_v15 = vmul.f32 %v1222_v13, %v109_v11  ;;  %vm116_vm3 = vweird.f32 %v1222_v13  ;;  %v1224_v24 = vpop.eup %1223 }
  0x9e   :  { %vm117_vm6 = vmor %vm115_vm5, %vm116_vm3 }
  0x9f   :  { %v112_v16 = vsub.f32 1.0, %v111_v15 }
  0xa1   :  { %v113_v18 = vmul.f32 %v1222_v13, %v112_v16 }
  0xa3   :  { %v114_v21 = vadd.f32 %v1222_v13, %v113_v18 }
  0xa5   :  { %v118_v23 = vsel %vm117_vm6, %v1222_v13, %v114_v21  ;;  %v40_v13 = vld [vmem:[%s1677_s0 + $0x18] sm:$0xff] }
  0xa6   :  { %v123_v25 = vsel %vm120_vm7, %v122_v22, %v118_v23  ;;  %v46_v14 = vpack.c.bf16 %v40_v13, %v39_v12 }
  0xa7   :  { %v125_v26 = vsel %vm1411_vm4, %v1224_v24, %v123_v25 }
  0xa8   :  { %127 = vrot.lane.b32.xlu0 %v125_v26, %s1380_s1  ;;  %1168 = vmatmul.msk.bf16.gmra.mxu0 %vm50_vm0, %v46_v14 }
 0x11a   :  { %v128_v27 = vpop.permute.xlu0 %127 }
 0x11b   :  { %v130_v28 = vmul.f32 %v128_v27, %v125_v26 }
 0x11d   :  { %1225 = vtanh.f32 %v130_v28  ;;  %195 = vrot.lane.b32.xlu2 %v130_v28, %s1381_s20 }
 0x123   :  { %v1226_v29 = vpop.eup %1225 }
 0x124   :  { %133 = vrot.lane.b32.xlu0 %v1226_v29, %s1382_s21 }
 0x125   :  { %v77_v19 = vpop.f32.mrf.mxu0 }
 0x126   :  { %v78_v21 = vadd.f32 %v1408_v6, %v77_v19 }
 0x177   :  { %v196_v7 = vpop.permute.xlu2 %195 }
 0x196   :  { %v134_v42 = vpop.permute.xlu0 %133 }
 0x197   :  { %v136_v43 = vmul.f32 %v134_v42, %v125_v26 }
 0x199   :  { %v137_v44 = vpack.c.bf16 %v136_v43, %v136_v43 }
 0x19b   :  { %140 = vrot.lane.b32.xlu1 %v137_v44, %s1381_s20 }
 0x20d   :  { %v141_v45 = vpop.permute.xlu1 %140 }
 0x20e   :  { %1172 = vmatmul.msk.bf16.vlgmr.msra.gmra.mxu1 %vm142_vm8, %v141_v45  ;;  %1173 = vmatmul.msk.bf16.vlgmr.msra.gmra.mxu2 %vm142_vm8, %v141_v45 }
 0x20f   :  { %385 = vmatpush.bf16.msra.mxu2 %v1422_v37  ;;  %372 = vmatpush.bf16.msra.mxu1 %v1420_v33 }
 0x213   :  { %386 = vmatpush.bf16.msra.mxu2 %v1429_v41  ;;  %373 = vmatpush.bf16.msra.mxu1 %v1425_v40 }
 0x28b   :  { %v1449_v46 = vpop.f32.mrf.mxu1 }
 0x291   :  { %v168_v49 = vpop.f32.mrf.mxu2 }
 0x292   :  { %v172_v50 = vadd.f32 %v168_v49, %v75_v48 }
 0x293   :  { %v157_v51 = vpop.f32.mrf.mxu1 }
 0x294   :  { %v1174_v52 = vmul.f32 -1.442695, %v172_v50 }
 0x296   :  { %1227 = vpow2.f32 %v1174_v52 }
 0x299   :  { %v170_v53 = vpop.f32.mrf.mxu2 }
 0x29c   :  { %v1228_v54 = vpop.eup %1227 }
 0x29d   :  { %v177_v55 = vadd.f32 1.0, %v1228_v54 }
 0x29f   :  { %1229 = vrcp.f32 %v177_v55  ;;  %v189_v59 = vand.u32 2147483648, %v177_v55  ;;  %v187_v61 = vand.u32 2147483647, %v177_v55  ;;  %vm183_vm10 = vweird.f32 %v177_v55 }
 0x2a0   :  { %1231 = vtanh.f32 %v172_v50 }
 0x2a1   :  { %v190_v63 = vor.u32 1.1754944e-38, %v189_v59  ;;  %vm188_vm12 = vcmp.eq.f32.partialorder %v187_v61, 8.507059e+37 }
 0x2a5   :  { %v1230_v56 = vpop.eup %1229 }
 0x2a6   :  { %v179_v57 = vmul.f32 %v1230_v56, %v177_v55  ;;  %vm184_vm9 = vweird.f32 %v1230_v56  ;;  %v1232_v1 = vpop.eup %1231 }
 0x2a7   :  { %vm185_vm11 = vmor %vm183_vm10, %vm184_vm9 }
 0x2a8   :  { %v180_v58 = vsub.f32 1.0, %v179_v57  ;;  %v79_v57 = vpop.f32.mrf.mxu0 }
 0x2aa   :  { %v181_v60 = vmul.f32 %v1230_v56, %v180_v58  ;;  %v80_v58 = vadd.f32 %v1408_v6, %v79_v57 }
 0x2ac   :  { %v182_v62 = vadd.f32 %v1230_v56, %v181_v60 }
 0x2ae   :  { %v186_v0 = vsel %vm185_vm11, %v1230_v56, %v182_v62 }
 0x2af   :  { %v191_v2 = vsel %vm188_vm12, %v190_v63, %v186_v0 }
 0x2b0   :  { %v193_v3 = vsel %vm1411_vm4, %v1232_v1, %v191_v2 }
 0x2b1   :  { %200 = vrot.lane.b32.xlu1 %v193_v3, %s1380_s1  ;;  %v198_v8 = vmul.f32 %v196_v7, %v193_v3 }
 0x323   :  { %v201_v4 = vpop.permute.xlu1 %200 }
 0x324   :  { %v203_v5 = vmul.f32 %v201_v4, %v193_v3 }
 0x326   :  { %205 = vrot.lane.b32.xlu2 %v203_v5, %s1381_s20 }
 0x380   :  { %v206_v9 = vpop.permute.xlu2 %205 }
 0x381   :  { %v208_v10 = vadd.f32 %v206_v9, %v198_v8 }
 0x383   :  { %1233 = vtanh.f32 %v208_v10 }
 0x389   :  { %v1234_v11 = vpop.eup %1233 }
 0x38a   :  { %211 = vrot.lane.b32.xlu0 %v1234_v11, %s1380_s1 }
 0x3fc   :  { %v212_v15 = vpop.permute.xlu0 %211 }
 0x3fd   :  { %v214_v16 = vmul.f32 %v212_v15, %v193_v3 }
 0x3ff   :  { %v215_v17 = vpack.c.bf16 %v214_v16, %v214_v16 }
 0x401   :  { %217 = vrot.lane.b32.xlu1 %v215_v17, %s1381_s20 }
 0x473   :  { %v218_v18 = vpop.permute.xlu1 %217 }
 0x474   :  { %1175 = vmatmul.msk.bf16.vlgmr.msra.gmra.mxu3 %vm142_vm8, %v218_v18  ;;  %1176 = vmatmul.msk.bf16.vlgmr.msrb.gmra.mxu1 %vm142_vm8, %v218_v18 }
 0x475   :  { %457 = vmatpush.bf16.msrb.mxu1 %v1422_v37  ;;  %444 = vmatpush.bf16.msra.mxu3 %v1420_v33 }
 0x479   :  { %458 = vmatpush.bf16.msrb.mxu1 %v1429_v41  ;;  %445 = vmatpush.bf16.msra.mxu3 %v1425_v40 }
 0x4f1   :  { %v244_v22 = vpop.f32.mrf.mxu1 }
 0x4f2   :  { %v248_v23 = vadd.f32 %v244_v22, %v78_v21 }
 0x4f4   :  { %v1177_v24 = vmul.f32 -1.442695, %v248_v23 }
 0x4f6   :  { %1235 = vpow2.f32 %v1177_v24  ;;  %v42_v24 = vld [vmem:[%s1677_s0 + $0x28] sm:$0xff] }
 0x4f7   :  { %v1472_v25 = vpop.f32.mrf.mxu3 }
 0x4f9   :  { %v246_v26 = vpop.f32.mrf.mxu1 }
 0x4fc   :  { %v1236_v27 = vpop.eup %1235 }
 0x4fd   :  { %v253_v28 = vadd.f32 1.0, %v1236_v27 }
 0x4ff   :  { %1237 = vrcp.f32 %v253_v28  ;;  %v233_v29 = vpop.f32.mrf.mxu3  ;;  %v265_v34 = vand.u32 2147483648, %v253_v28  ;;  %v263_v36 = vand.u32 2147483647, %v253_v28  ;;  %vm259_vm14 = vweird.f32 %v253_v28 }
 0x500   :  { %1239 = vtanh.f32 %v248_v23  ;;  %v41_v23 = vld [vmem:[%s1677_s0 + $0x20] sm:$0xff] }
 0x501   :  { %v266_v39 = vor.u32 1.1754944e-38, %v265_v34  ;;  %vm264_vm1 = vcmp.eq.f32.partialorder %v263_v36, 8.507059e+37  ;;  %v47_v26 = vpack.c.bf16 %v42_v24, %v41_v23 }
 0x503   :  { %1169 = vmatmul.msk.bf16.gmra.mxu0 %vm50_vm0, %v47_v26 }
 0x505   :  { %v1238_v30 = vpop.eup %1237 }
 0x506   :  { %v255_v31 = vmul.f32 %v1238_v30, %v253_v28  ;;  %vm260_vm13 = vweird.f32 %v1238_v30  ;;  %v1240_v43 = vpop.eup %1239 }
 0x507   :  { %vm261_vm15 = vmor %vm259_vm14, %vm260_vm13 }
 0x508   :  { %v256_v32 = vsub.f32 1.0, %v255_v31 }
 0x50a   :  { %v257_v35 = vmul.f32 %v1238_v30, %v256_v32 }
 0x50c   :  { %v258_v38 = vadd.f32 %v1238_v30, %v257_v35 }
 0x50e   :  { %v262_v42 = vsel %vm261_vm15, %v1238_v30, %v258_v38 }
 0x50f   :  { %v267_v44 = vsel %vm264_vm1, %v266_v39, %v262_v42 }
 0x510   :  { %v269_v45 = vsel %vm1411_vm4, %v1240_v43, %v267_v44 }
 0x511   :  { %272 = vrot.lane.b32.xlu2 %v269_v45, %s1380_s1  ;;  %v270_v49 = vmul.f32 %v269_v45, %v208_v10 }
 0x56b   :  { %v273_v47 = vpop.permute.xlu2 %272 }
 0x56c   :  { %v275_v48 = vmul.f32 %v273_v47, %v269_v45 }
 0x56e   :  { %277 = vrot.lane.b32.xlu0 %v275_v48, %s1381_s20 }
 0x580   :  { %v82_v32 = vpop.f32.mrf.mxu0 }
 0x581   :  { %v83_v34 = vadd.f32 %v1408_v6, %v82_v32 }
 0x5e0   :  { %v278_v50 = vpop.permute.xlu0 %277 }
 0x5e1   :  { %v280_v51 = vadd.f32 %v278_v50, %v270_v49 }
 0x5e3   :  { %1241 = vtanh.f32 %v280_v51 }
 0x5e9   :  { %v1242_v52 = vpop.eup %1241 }
 0x5ea   :  { %283 = vrot.lane.b32.xlu1 %v1242_v52, %s1380_s1 }
 0x65c   :  { %v284_v53 = vpop.permute.xlu1 %283 }
 0x65d   :  { %v286_v54 = vmul.f32 %v284_v53, %v269_v45 }
 0x65f   :  { %v287_v55 = vpack.c.bf16 %v286_v54, %v286_v54 }
 0x661   :  { %289 = vrot.lane.b32.xlu2 %v287_v55, %s1381_s20 }
 0x6bb   :  { %v290_v56 = vpop.permute.xlu2 %289 }
 0x6bc   :  { %1178 = vmatmul.msk.bf16.vlgmr.msrb.gmra.mxu2 %vm142_vm8, %v290_v56  ;;  %1179 = vmatmul.msk.bf16.vlgmr.msrb.gmra.mxu3 %vm142_vm8, %v290_v56 }
 0x6bd   :  { %529 = vmatpush.bf16.msrb.mxu3 %v1422_v37  ;;  %516 = vmatpush.bf16.msrb.mxu2 %v1420_v33 }
 0x6c1   :  { %530 = vmatpush.bf16.msrb.mxu3 %v1429_v41  ;;  %517 = vmatpush.bf16.msrb.mxu2 %v1425_v40 }
 0x73f   :  { %v1487_v59 = vpop.f32.mrf.mxu2  ;;  %v316_v60 = vpop.f32.mrf.mxu3 }
 0x740   :  { %v320_v61 = vadd.f32 %v316_v60, %v80_v58 }
 0x742   :  { %v1180_v62 = vmul.f32 -1.442695, %v320_v61 }
 0x744   :  { %1243 = vpow2.f32 %v1180_v62 }
 0x747   :  { %v305_v63 = vpop.f32.mrf.mxu2  ;;  %v318_v0 = vpop.f32.mrf.mxu3 }
 0x74a   :  { %v1244_v1 = vpop.eup %1243 }
 0x74b   :  { %v325_v2 = vadd.f32 1.0, %v1244_v1 }
 0x74d   :  { %1245 = vrcp.f32 %v325_v2  ;;  %v337_v7 = vand.u32 2147483648, %v325_v2  ;;  %v335_v9 = vand.u32 2147483647, %v325_v2  ;;  %vm331_vm3 = vweird.f32 %v325_v2 }
 0x74e   :  { %1247 = vtanh.f32 %v320_v61  ;;  %v1519_v61 = vld [vmem:[#allocation2 + $0x78] ss:$0 sm:$0xff] }
 0x74f   :  { %v338_v11 = vor.u32 1.1754944e-38, %v337_v7  ;;  %vm336_vm6 = vcmp.eq.f32.partialorder %v335_v9, 8.507059e+37  ;;  %v156_v62 = vadd.f32 %v1519_v61, %v1449_v46 }
 0x751   :  { %v1194_v63 = vmul.f32 -1.442695, %v156_v62 }
 0x753   :  { %v1246_v3 = vpop.eup %1245 }
 0x754   :  { %v327_v4 = vmul.f32 %v1246_v3, %v325_v2  ;;  %vm332_vm2 = vweird.f32 %v1246_v3  ;;  %v1248_v13 = vpop.eup %1247 }
 0x755   :  { %vm333_vm5 = vmor %vm331_vm3, %vm332_vm2 }
 0x756   :  { %v328_v5 = vsub.f32 1.0, %v327_v4 }
 0x758   :  { %v329_v8 = vmul.f32 %v1246_v3, %v328_v5 }
 0x75a   :  { %v330_v10 = vadd.f32 %v1246_v3, %v329_v8 }
 0x75c   :  { %v334_v12 = vsel %vm333_vm5, %v1246_v3, %v330_v10 }
 0x75d   :  { %v339_v14 = vsel %vm336_vm6, %v338_v11, %v334_v12 }
 0x75e   :  { %v341_v15 = vsel %vm1411_vm4, %v1248_v13, %v339_v14 }
 0x75f   :  { %344 = vrot.lane.b32.xlu0 %v341_v15, %s1380_s1  ;;  %v342_v18 = vmul.f32 %v341_v15, %v280_v51 }
 0x7d1   :  { %v345_v16 = vpop.permute.xlu0 %344 }
 0x7d2   :  { %v347_v17 = vmul.f32 %v345_v16, %v341_v15 }
 0x7d4   :  { %349 = vrot.lane.b32.xlu1 %v347_v17, %s1381_s20 }
 0x846   :  { %v350_v19 = vpop.permute.xlu1 %349 }
 0x847   :  { %v352_v21 = vadd.f32 %v350_v19, %v342_v18  ;;  %v84_v18 = vpop.f32.mrf.mxu0 }
 0x848   :  { %v85_v19 = vadd.f32 %v1408_v6, %v84_v18  ;;  %v232_v18 = vadd.f32 %v1519_v61, %v1472_v25 }
 0x849   :  { %1249 = vtanh.f32 %v352_v21 }
 0x84f   :  { %v1250_v22 = vpop.eup %1249 }
 0x850   :  { %355 = vrot.lane.b32.xlu2 %v1250_v22, %s1380_s1 }
 0x8aa   :  { %v356_v27 = vpop.permute.xlu2 %355 }
 0x8ab   :  { %v358_v28 = vmul.f32 %v356_v27, %v341_v15 }
 0x8ad   :  { %v359_v29 = vpack.c.bf16 %v358_v28, %v358_v28 }
 0x8af   :  { %361 = vrot.lane.b32.xlu0 %v359_v29, %s1381_s20 }
 0x921   :  { %v362_v30 = vpop.permute.xlu0 %361 }
 0x922   :  { %1181 = vmatmul.msk.bf16.vlgmr.msra.gmra.mxu1 %vm142_vm8, %v362_v30  ;;  %1182 = vmatmul.msk.bf16.vlgmr.msra.gmra.mxu2 %vm142_vm8, %v362_v30 }
 0x923   :  { %601 = vmatpush.bf16.msra.mxu1 %v1422_v37  ;;  %660 = vmatpush.bf16.msra.mxu2 %v1420_v33 }
 0x927   :  { %602 = vmatpush.bf16.msra.mxu1 %v1429_v41  ;;  %661 = vmatpush.bf16.msra.mxu2 %v1425_v40 }
 0x99f   :  { %v1508_v31 = vpop.f32.mrf.mxu1 }
 0x9a5   :  { %v388_v35 = vpop.f32.mrf.mxu2 }
 0x9a6   :  { %v392_v36 = vadd.f32 %v388_v35, %v83_v34 }
 0x9a7   :  { %v377_v38 = vpop.f32.mrf.mxu1 }
 0x9a8   :  { %v1183_v39 = vmul.f32 -1.442695, %v392_v36 }
 0x9aa   :  { %1251 = vpow2.f32 %v1183_v39 }
 0x9ad   :  { %v390_v42 = vpop.f32.mrf.mxu2 }
 0x9b0   :  { %v1252_v43 = vpop.eup %1251 }
 0x9b1   :  { %v397_v44 = vadd.f32 1.0, %v1252_v43 }
 0x9b3   :  { %1253 = vrcp.f32 %v397_v44  ;;  %v409_v41 = vand.u32 2147483648, %v397_v44  ;;  %v407_v47 = vand.u32 2147483647, %v397_v44  ;;  %vm403_vm9 = vweird.f32 %v397_v44 }
 0x9b4   :  { %1255 = vtanh.f32 %v392_v36 }
 0x9b5   :  { %v410_v49 = vor.u32 1.1754944e-38, %v409_v41  ;;  %vm408_vm11 = vcmp.eq.f32.partialorder %v407_v47, 8.507059e+37 }
 0x9b9   :  { %v1254_v37 = vpop.eup %1253 }
 0x9ba   :  { %v399_v33 = vmul.f32 %v1254_v37, %v397_v44  ;;  %vm404_vm7 = vweird.f32 %v1254_v37  ;;  %v1256_v51 = vpop.eup %1255 }
 0x9bb   :  { %vm405_vm10 = vmor %vm403_vm9, %vm404_vm7 }
 0x9bc   :  { %v400_v45 = vsub.f32 1.0, %v399_v33 }
 0x9be   :  { %v401_v40 = vmul.f32 %v1254_v37, %v400_v45 }
 0x9c0   :  { %v402_v48 = vadd.f32 %v1254_v37, %v401_v40 }
 0x9c2   :  { %v406_v50 = vsel %vm405_vm10, %v1254_v37, %v402_v48 }
 0x9c3   :  { %v411_v52 = vsel %vm408_vm11, %v410_v49, %v406_v50 }
 0x9c4   :  { %v413_v53 = vsel %vm1411_vm4, %v1256_v51, %v411_v52 }
 0x9c5   :  { %416 = vrot.lane.b32.xlu1 %v413_v53, %s1380_s1  ;;  %v414_v56 = vmul.f32 %v413_v53, %v352_v21 }
 0xa37   :  { %v417_v54 = vpop.permute.xlu1 %416 }
 0xa38   :  { %v419_v55 = vmul.f32 %v417_v54, %v413_v53 }
 0xa3a   :  { %421 = vrot.lane.b32.xlu2 %v419_v55, %s1381_s20 }
 0xa94   :  { %v422_v57 = vpop.permute.xlu2 %421 }
 0xa95   :  { %v1515_v58 = vadd.f32 %v422_v57, %v414_v56 }
 0xa97   :  { %1257 = vtanh.f32 %v1515_v58 }
 0xa98   :  { %1259 = vpow2.f32 %v1194_v63  ;;  %v43_v63 = vld [vmem:[%s1677_s0 + $0x30] sm:$0xff] }
 0xa9d   :  { %v1258_v60 = vpop.eup %1257 }
 0xa9e   :  { %427 = vrot.lane.b32.xlu0 %v1258_v60, %s1380_s1  ;;  %v1260_v0 = vpop.eup %1259 }
 0xa9f   :  { %v677_v1 = vadd.f32 1.0, %v1260_v0 }
 0xaa1   :  { %1261 = vrcp.f32 %v677_v1  ;;  %v689_v11 = vand.u32 2147483648, %v677_v1  ;;  %vm683_vm13 = vweird.f32 %v677_v1  ;;  %v687_v12 = vand.u32 2147483647, %v677_v1 }
 0xaa2   :  { %1263 = vtanh.f32 %v156_v62  ;;  %v669_v62 = vld [vmem:[#allocation2 + $0x68] sm:$0xff] }
 0xaa3   :  { %v690_v13 = vor.u32 1.1754944e-38, %v689_v11  ;;  %vm688_vm15 = vcmp.eq.f32.partialorder %v687_v12, 8.507059e+37 }
 0xaa7   :  { %v1262_v2 = vpop.eup %1261 }
 0xaa8   :  { %v679_v3 = vmul.f32 %v1262_v2, %v677_v1  ;;  %vm684_vm12 = vweird.f32 %v1262_v2  ;;  %v1264_v15 = vpop.eup %1263  ;;  %v44_v1 = vld [vmem:[%s1677_s0 + $0x38] sm:$0xff] }
 0xaa9   :  { %vm685_vm14 = vmor %vm683_vm13, %vm684_vm12 }
 0xaaa   :  { %v680_v4 = vsub.f32 1.0, %v679_v3  ;;  %v668_v3 = vld [vmem:[#allocation2 + $0x60] sm:$0xff] }
 0xaac   :  { %v681_v5 = vmul.f32 %v1262_v2, %v680_v4  ;;  %v48_v4 = vpack.c.bf16 %v44_v1, %v43_v63 }
 0xaae   :  { %v682_v9 = vadd.f32 %v1262_v2, %v681_v5  ;;  %1170 = vmatmul.msk.bf16.gmra.mxu0 %vm50_vm0, %v48_v4 }
 0xab0   :  { %v686_v46 = vsel %vm685_vm14, %v1262_v2, %v682_v9  ;;  %v667_v2 = vld [vmem:[#allocation2 + $0x58] sm:$0xff] }
 0xab1   :  { %v691_v14 = vsel %vm688_vm15, %v690_v13, %v686_v46  ;;  %v1556_v5 = vpack.c.bf16 %v668_v3, %v667_v2 }
 0xab2   :  { %v693_v16 = vsel %vm1411_vm4, %v1264_v15, %v691_v14 }
 0xb10   :  { %v428_v7 = vpop.permute.xlu0 %427 }
 0xb11   :  { %v430_v8 = vmul.f32 %v428_v7, %v413_v53 }
 0xb13   :  { %v431_v10 = vpack.c.bf16 %v430_v8, %v430_v8 }
 0xb15   :  { %433 = vrot.lane.b32.xlu1 %v431_v10, %s1381_s20 }
 0xb1d   :  { %695 = vrot.lane.b32.xlu1 %v693_v16, %s1380_s1 }
 0xb2b   :  { %v87_v9 = vpop.f32.mrf.mxu0 }
 0xb2c   :  { %v88_v10 = vadd.f32 %v1408_v6, %v87_v9 }
 0xb87   :  { %v434_v17 = vpop.permute.xlu1 %433 }
 0xb88   :  { %1184 = vmatmul.msk.bf16.vlgmr.msra.gmra.mxu3 %vm142_vm8, %v434_v17  ;;  %1185 = vmatmul.msk.bf16.vlgmr.msrb.gmra.mxu1 %vm142_vm8, %v434_v17 }
 0xb8f   :  { %v696_v45 = vpop.permute.xlu1 %695 }
 0xb90   :  { %v1535_v41 = vmul.f32 %v696_v45, %v693_v16 }
 0xc05   :  { %v460_v21 = vpop.f32.mrf.mxu1 }
 0xc06   :  { %v464_v22 = vadd.f32 %v460_v21, %v85_v19 }
 0xc08   :  { %v1186_v23 = vmul.f32 -1.442695, %v464_v22 }
 0xc0a   :  { %1265 = vpow2.f32 %v1186_v23 }
 0xc0b   :  { %v1530_v24 = vpop.f32.mrf.mxu3 }
 0xc0d   :  { %v462_v26 = vpop.f32.mrf.mxu1 }
 0xc10   :  { %v1266_v27 = vpop.eup %1265 }
 0xc11   :  { %v469_v28 = vadd.f32 1.0, %v1266_v27 }
 0xc13   :  { %1267 = vrcp.f32 %v469_v28  ;;  %v449_v29 = vpop.f32.mrf.mxu3  ;;  %v481_v35 = vand.u32 2147483648, %v469_v28  ;;  %v479_v38 = vand.u32 2147483647, %v469_v28  ;;  %vm475_vm2 = vweird.f32 %v469_v28 }
 0xc14   :  { %1269 = vtanh.f32 %v464_v22 }
 0xc15   :  { %v482_v42 = vor.u32 1.1754944e-38, %v481_v35  ;;  %vm480_vm5 = vcmp.eq.f32.partialorder %v479_v38, 8.507059e+37  ;;  %1271 = vtanh.f32 %v1535_v41 }
 0xc19   :  { %v1268_v30 = vpop.eup %1267 }
 0xc1a   :  { %v471_v32 = vmul.f32 %v1268_v30, %v469_v28  ;;  %vm476_vm1 = vweird.f32 %v1268_v30  ;;  %v1270_v44 = vpop.eup %1269 }
 0xc1b   :  { %vm477_vm3 = vmor %vm475_vm2, %vm476_vm1  ;;  %v1272_v48 = vpop.eup %1271 }
 0xc1c   :  { %v472_v34 = vsub.f32 1.0, %v471_v32 }
 0xc1e   :  { %v473_v36 = vmul.f32 %v1268_v30, %v472_v34 }
 0xc20   :  { %v474_v39 = vadd.f32 %v1268_v30, %v473_v36 }
 0xc22   :  { %v478_v43 = vsel %vm477_vm3, %v1268_v30, %v474_v39 }
 0xc23   :  { %v483_v37 = vsel %vm480_vm5, %v482_v42, %v478_v43 }
 0xc24   :  { %v485_v33 = vsel %vm1411_vm4, %v1270_v44, %v483_v37 }
 0xc25   :  { %488 = vrot.lane.b32.xlu2 %v485_v33, %s1380_s1  ;;  %v486_v49 = vmul.f32 %v485_v33, %v1515_v58  ;;  %v670_v58 = vld [vmem:[#allocation2 + $0x70] sm:$0xff] }
 0xc26   :  { %v1550_v0 = vpack.c.bf16 %v670_v58, %v669_v62 }
 0xc28   :  { %718 = vmatpush.bf16.msra.mxu3 %v1550_v0  ;;  %781 = vmatpush.bf16.msra.mxu0 %v1550_v0 }
 0xc29   :  { %840 = vmatpush.bf16.msrb.mxu1 %v1550_v0 }
 0xc2c   :  { %719 = vmatpush.bf16.msra.mxu3 %v1556_v5  ;;  %782 = vmatpush.bf16.msra.mxu0 %v1556_v5 }
 0xc2d   :  { %841 = vmatpush.bf16.msrb.mxu1 %v1556_v5 }
 0xc7f   :  { %v489_v40 = vpop.permute.xlu2 %488 }
 0xc80   :  { %v491_v47 = vmul.f32 %v489_v40, %v485_v33 }
 0xc82   :  { %493 = vrot.lane.b32.xlu0 %v491_v47, %s1381_s20 }
 0xc8a   :  { %701 = vrot.lane.b32.xlu0 %v1272_v48, %s1382_s21 }
 0xcf4   :  { %v494_v50 = vpop.permute.xlu0 %493 }
 0xcf5   :  { %v1541_v51 = vadd.f32 %v494_v50, %v486_v49 }
 0xcf7   :  { %1273 = vtanh.f32 %v1541_v51 }
 0xcfc   :  { %v702_v53 = vpop.permute.xlu0 %701 }
 0xcfd   :  { %v1274_v52 = vpop.eup %1273  ;;  %v704_v54 = vmul.f32 %v702_v53, %v693_v16 }
 0xcfe   :  { %499 = vrot.lane.b32.xlu2 %v1274_v52, %s1380_s1 }
 0xcff   :  { %v705_v55 = vpack.c.bf16 %v704_v54, %v704_v54 }
 0xd06   :  { %707 = vrot.lane.b32.xlu2 %v705_v55, %s1381_s20 }
 0xd58   :  { %v500_v56 = vpop.permute.xlu2 %499 }
 0xd59   :  { %v502_v57 = vmul.f32 %v500_v56, %v485_v33 }
 0xd5b   :  { %v503_v60 = vpack.c.bf16 %v502_v57, %v502_v57 }
 0xd5d   :  { %505 = vrot.lane.b32.xlu1 %v503_v60, %s1381_s20 }
 0xd60   :  { %v708_v8 = vpop.permute.xlu2 %707 }
 0xdcf   :  { %v506_v7 = vpop.permute.xlu1 %505 }
 0xdd0   :  { %1187 = vmatmul.msk.bf16.vlgmr.msrb.gmra.mxu2 %vm142_vm8, %v506_v7  ;;  %1188 = vmatmul.msk.bf16.vlgmr.msrb.gmra.mxu3 %vm142_vm8, %v506_v7 }
 0xdd1   :  { %899 = vmatpush.bf16.msrb.mxu2 %v1550_v0  ;;  %958 = vmatpush.bf16.msrb.mxu3 %v1550_v0 }
 0xdd5   :  { %900 = vmatpush.bf16.msrb.mxu2 %v1556_v5  ;;  %959 = vmatpush.bf16.msrb.mxu3 %v1556_v5 }
 0xde0   :  { %1195 = vmatmul.msk.bf16.vlgmr.msra.gmra.mxu3 %vm142_vm8, %v708_v8 }
 0xe53   :  { %v1572_v11 = vpop.f32.mrf.mxu2  ;;  %v532_v12 = vpop.f32.mrf.mxu3 }
 0xe54   :  { %v536_v46 = vadd.f32 %v532_v12, %v88_v10 }
 0xe56   :  { %v1189_v13 = vmul.f32 -1.442695, %v536_v46 }
 0xe58   :  { %1275 = vpow2.f32 %v1189_v13 }
 0xe5b   :  { %v521_v14 = vpop.f32.mrf.mxu2  ;;  %v534_v15 = vpop.f32.mrf.mxu3 }
 0xe5c   :  { %v89_v15 = vpop.f32.mrf.mxu0 }
 0xe5e   :  { %v1276_v16 = vpop.eup %1275 }
 0xe5f   :  { %v541_v17 = vadd.f32 1.0, %v1276_v16 }
 0xe61   :  { %1277 = vrcp.f32 %v541_v17  ;;  %v553_v29 = vand.u32 2147483648, %v541_v17  ;;  %v551_v32 = vand.u32 2147483647, %v541_v17  ;;  %vm547_vm6 = vweird.f32 %v541_v17 }
 0xe63   :  { %v721_v19 = vpop.f32.mrf.mxu3  ;;  %v554_v38 = vor.u32 1.1754944e-38, %v553_v29  ;;  %vm552_vm9 = vcmp.eq.f32.partialorder %v551_v32, 8.507059e+37 }
 0xe64   :  { %v725_v21 = vadd.f32 %v721_v19, %v232_v18 }
 0xe66   :  { %v1196_v22 = vmul.f32 -1.442695, %v725_v21 }
 0xe67   :  { %v1278_v23 = vpop.eup %1277 }
 0xe68   :  { %1279 = vpow2.f32 %v1196_v22  ;;  %v543_v26 = vmul.f32 %v1278_v23, %v541_v17  ;;  %vm548_vm0 = vweird.f32 %v1278_v23 }
 0xe69   :  { %1281 = vtanh.f32 %v536_v46  ;;  %vm549_vm7 = vmor %vm547_vm6, %vm548_vm0 }
 0xe6a   :  { %v544_v27 = vsub.f32 1.0, %v543_v26 }
 0xe6b   :  { %v723_v28 = vpop.f32.mrf.mxu3 }
 0xe6c   :  { %v545_v30 = vmul.f32 %v1278_v23, %v544_v27 }
 0xe6e   :  { %v1280_v34 = vpop.eup %1279  ;;  %v546_v35 = vadd.f32 %v1278_v23, %v545_v30 }
 0xe6f   :  { %v730_v36 = vadd.f32 1.0, %v1280_v34  ;;  %v1282_v39 = vpop.eup %1281 }
 0xe70   :  { %v550_v25 = vsel %vm549_vm7, %v1278_v23, %v546_v35 }
 0xe71   :  { %1283 = vrcp.f32 %v730_v36  ;;  %v555_v42 = vsel %vm552_vm9, %v554_v38, %v550_v25  ;;  %v742_v45 = vand.u32 2147483648, %v730_v36  ;;  %v740_v47 = vand.u32 2147483647, %v730_v36 }
 0xe72   :  { %v557_v43 = vsel %vm1411_vm4, %v1282_v39, %v555_v42  ;;  %1285 = vtanh.f32 %v725_v21  ;;  %vm736_vm11 = vweird.f32 %v730_v36  ;;  %v304_v21 = vadd.f32 %v1519_v61, %v1487_v59 }
 0xe73   :  { %560 = vrot.lane.b32.xlu0 %v557_v43, %s1380_s1  ;;  %v743_v49 = vor.u32 1.1754944e-38, %v742_v45  ;;  %vm741_vm13 = vcmp.eq.f32.partialorder %v740_v47, 8.507059e+37  ;;  %v558_v60 = vmul.f32 %v557_v43, %v1541_v51 }
 0xe77   :  { %v1284_v44 = vpop.eup %1283 }
 0xe78   :  { %v732_v37 = vmul.f32 %v1284_v44, %v730_v36  ;;  %vm737_vm10 = vweird.f32 %v1284_v44  ;;  %v1286_v52 = vpop.eup %1285 }
 0xe79   :  { %vm738_vm12 = vmor %vm736_vm11, %vm737_vm10 }
 0xe7a   :  { %v733_v33 = vsub.f32 1.0, %v732_v37 }
 0xe7b   :  { %748 = vrot.lane.b32.xlu0 %v1535_v41, %s1381_s20 }
 0xe7c   :  { %v734_v40 = vmul.f32 %v1284_v44, %v733_v33 }
 0xe7e   :  { %v735_v48 = vadd.f32 %v1284_v44, %v734_v40 }
 0xe80   :  { %v739_v50 = vsel %vm738_vm12, %v1284_v44, %v735_v48 }
 0xe81   :  { %v744_v53 = vsel %vm741_vm13, %v743_v49, %v739_v50 }
 0xe82   :  { %v746_v54 = vsel %vm1411_vm4, %v1286_v52, %v744_v53 }
 0xe83   :  { %753 = vrot.lane.b32.xlu1 %v746_v54, %s1380_s1 }
 0xee5   :  { %v561_v55 = vpop.permute.xlu0 %560 }
 0xee6   :  { %v563_v56 = vmul.f32 %v561_v55, %v557_v43 }
 0xee8   :  { %565 = vrot.lane.b32.xlu2 %v563_v56, %s1381_s20 }
 0xeed   :  { %v749_v1 = vpop.permute.xlu0 %748 }
 0xeee   :  { %v751_v2 = vmul.f32 %v749_v1, %v746_v54 }
 0xef5   :  { %v754_v41 = vpop.permute.xlu1 %753 }
 0xef6   :  { %v756_v57 = vmul.f32 %v754_v41, %v746_v54 }
 0xef8   :  { %758 = vrot.lane.b32.xlu1 %v756_v57, %s1381_s20 }
 0xf42   :  { %v566_v62 = vpop.permute.xlu2 %565 }
 0xf43   :  { %v1587_v58 = vadd.f32 %v566_v62, %v558_v60 }
 0xf45   :  { %1287 = vtanh.f32 %v1587_v58 }
 0xf4b   :  { %v1288_v63 = vpop.eup %1287 }
 0xf4c   :  { %571 = vrot.lane.b32.xlu2 %v1288_v63, %s1380_s1 }
 0xf6a   :  { %v759_v3 = vpop.permute.xlu1 %758 }
 0xf6b   :  { %v1591_v4 = vadd.f32 %v759_v3, %v751_v2 }
 0xf6d   :  { %1289 = vtanh.f32 %v1591_v4 }
 0xf73   :  { %v1290_v7 = vpop.eup %1289 }
 0xf74   :  { %764 = vrot.lane.b32.xlu0 %v1290_v7, %s1380_s1 }
 0xfa6   :  { %v572_v8 = vpop.permute.xlu2 %571 }
 0xfa7   :  { %v574_v51 = vmul.f32 %v572_v8, %v557_v43  ;;  %v90_v43 = vadd.f32 %v1408_v6, %v89_v15 }
 0xfa9   :  { %v575_v9 = vpack.c.bf16 %v574_v51, %v574_v51 }
 0xfab   :  { %577 = vrot.lane.b32.xlu1 %v575_v9, %s1381_s20 }
 0xfe6   :  { %v765_v10 = vpop.permute.xlu0 %764 }
 0xfe7   :  { %v767_v12 = vmul.f32 %v765_v10, %v746_v54 }
 0xfe9   :  { %v768_v46 = vpack.c.bf16 %v767_v12, %v767_v12 }
 0xfeb   :  { %770 = vrot.lane.b32.xlu2 %v768_v46, %s1381_s20 }
0x101d   :  { %v578_v13 = vpop.permute.xlu1 %577 }
0x101e   :  { %1190 = vmatmul.msk.bf16.vlgmr.msrb.gmra.mxu0 %vm142_vm8, %v578_v13  ;;  %1191 = vmatmul.msk.bf16.vlgmr.msra.gmra.mxu1 %vm142_vm8, %v578_v13 }
0x101f   :  { %1017 = vmatpush.bf16.msrb.mxu0 %v1550_v0  ;;  %1076 = vmatpush.bf16.msra.mxu1 %v1550_v0 }
0x1023   :  { %1018 = vmatpush.bf16.msrb.mxu0 %v1556_v5  ;;  %1077 = vmatpush.bf16.msra.mxu1 %v1556_v5 }
0x1045   :  { %v771_v14 = vpop.permute.xlu2 %770 }
0x1046   :  { %1197 = vmatmul.msk.bf16.vlgmr.msra.gmra.mxu0 %vm142_vm8, %v771_v14 }
0x109b   :  { %v1604_v16 = vpop.f32.mrf.mxu0  ;;  %v604_v17 = vpop.f32.mrf.mxu1 }
0x109c   :  { %v608_v44 = vadd.f32 %v604_v17, %v90_v43 }
0x109e   :  { %v1192_v37 = vmul.f32 -1.442695, %v608_v44 }
0x10a3   :  { %v593_v18 = vpop.f32.mrf.mxu0  ;;  %v606_v19 = vpop.f32.mrf.mxu1 }
0x10c3   :  { %v784_v22 = vpop.f32.mrf.mxu0 }
0x10c4   :  { %v788_v23 = vadd.f32 %v784_v22, %v304_v21 }
0x10c6   :  { %v1198_v26 = vmul.f32 -1.442695, %v788_v23 }
0x10c8   :  { %1291 = vpow2.f32 %v1198_v26 }
0x10cb   :  { %v786_v0 = vpop.f32.mrf.mxu0 }
0x10ce   :  { %v1292_v27 = vpop.eup %1291 }
0x10cf   :  { %v793_v28 = vadd.f32 1.0, %v1292_v27 }
0x10d1   :  { %1293 = vrcp.f32 %v793_v28  ;;  %v805_v32 = vand.u32 2147483648, %v793_v28  ;;  %v803_v35 = vand.u32 2147483647, %v793_v28  ;;  %vm799_vm15 = vweird.f32 %v793_v28 }
0x10d2   :  { %1295 = vtanh.f32 %v788_v23 }
0x10d3   :  { %v806_v59 = vor.u32 1.1754944e-38, %v805_v32  ;;  %vm804_vm2 = vcmp.eq.f32.partialorder %v803_v35, 8.507059e+37  ;;  %1297 = vpow2.f32 %v1192_v37 }
0x10d7   :  { %v1294_v5 = vpop.eup %1293 }
0x10d8   :  { %v795_v29 = vmul.f32 %v1294_v5, %v793_v28  ;;  %vm800_vm14 = vweird.f32 %v1294_v5  ;;  %v1296_v25 = vpop.eup %1295 }
0x10d9   :  { %vm801_vm1 = vmor %vm799_vm15, %vm800_vm14  ;;  %v1298_v33 = vpop.eup %1297 }
0x10da   :  { %v796_v30 = vsub.f32 1.0, %v795_v29  ;;  %v613_v45 = vadd.f32 1.0, %v1298_v33 }
0x10dc   :  { %v797_v34 = vmul.f32 %v1294_v5, %v796_v30  ;;  %1299 = vrcp.f32 %v613_v45  ;;  %v625_v54 = vand.u32 2147483648, %v613_v45  ;;  %vm619_vm5 = vweird.f32 %v613_v45 }
0x10dd   :  { %v623_v55 = vand.u32 2147483647, %v613_v45  ;;  %1301 = vtanh.f32 %v608_v44 }
0x10de   :  { %v798_v36 = vadd.f32 %v1294_v5, %v797_v34  ;;  %v626_v56 = vor.u32 1.1754944e-38, %v625_v54 }
0x10df   :  { %vm624_vm6 = vcmp.eq.f32.partialorder %v623_v55, 8.507059e+37 }
0x10e0   :  { %v802_v38 = vsel %vm801_vm1, %v1294_v5, %v798_v36 }
0x10e1   :  { %v807_v39 = vsel %vm804_vm2, %v806_v59, %v802_v38 }
0x10e2   :  { %v809_v42 = vsel %vm1411_vm4, %v1296_v25, %v807_v39  ;;  %v1300_v40 = vpop.eup %1299 }
0x10e3   :  { %812 = vrot.lane.b32.xlu0 %v809_v42, %s1380_s1  ;;  %v615_v47 = vmul.f32 %v1300_v40, %v613_v45  ;;  %vm620_vm3 = vweird.f32 %v1300_v40  ;;  %v1302_v57 = vpop.eup %1301  ;;  %v810_v62 = vmul.f32 %v809_v42, %v1591_v4  ;;  %v376_v4 = vadd.f32 %v1519_v61, %v1508_v31 }
0x10e4   :  { %vm621_vm0 = vmor %vm619_vm5, %vm620_vm3 }
0x10e5   :  { %v616_v48 = vsub.f32 1.0, %v615_v47 }
0x10e7   :  { %v617_v49 = vmul.f32 %v1300_v40, %v616_v48 }
0x10e9   :  { %v618_v52 = vadd.f32 %v1300_v40, %v617_v49 }
0x10eb   :  { %v622_v6 = vsel %vm621_vm0, %v1300_v40, %v618_v52 }
0x10ec   :  { %v627_v41 = vsel %vm624_vm6, %v626_v56, %v622_v6 }
0x10ed   :  { %v629_v60 = vsel %vm1411_vm4, %v1302_v57, %v627_v41 }
0x10ee   :  { %v630_v27 = vmul.f32 %v629_v60, %v1587_v58 }
0x1155   :  { %v813_v50 = vpop.permute.xlu0 %812 }
0x1156   :  { %v815_v53 = vmul.f32 %v813_v50, %v809_v42  ;;  %v448_v50 = vadd.f32 %v1519_v61, %v1530_v24 }
0x1158   :  { %817 = vrot.lane.b32.xlu1 %v815_v53, %s1381_s20 }
0x1160   :  { %632 = vrot.lane.b32.xlu1 %v629_v60, %s1380_s1 }
0x11ca   :  { %v818_v63 = vpop.permute.xlu1 %817 }
0x11cb   :  { %v820_v1 = vadd.f32 %v818_v63, %v810_v62 }
0x11cd   :  { %1303 = vtanh.f32 %v820_v1 }
0x11d2   :  { %v633_v51 = vpop.permute.xlu1 %632 }
0x11d3   :  { %v1304_v2 = vpop.eup %1303  ;;  %v635_v9 = vmul.f32 %v633_v51, %v629_v60 }
0x11d4   :  { %823 = vrot.lane.b32.xlu2 %v1304_v2, %s1380_s1 }
0x122e   :  { %v824_v3 = vpop.permute.xlu2 %823 }
0x122f   :  { %v826_v7 = vmul.f32 %v824_v3, %v809_v42 }
0x1231   :  { %v827_v8 = vpack.c.bf16 %v826_v7, %v826_v7 }
0x1233   :  { %829 = vrot.lane.b32.xlu0 %v827_v8, %s1381_s20 }
0x123b   :  { %637 = vrot.lane.b32.xlu0 %v635_v9, %s1381_s20 }
0x12a5   :  { %v830_v10 = vpop.permute.xlu0 %829 }
0x12a6   :  { %1199 = vmatmul.msk.bf16.vlgmr.msrb.gmra.mxu1 %vm142_vm8, %v830_v10 }
0x12ad   :  { %v638_v0 = vpop.permute.xlu0 %637 }
0x12ae   :  { %v640_v5 = vadd.f32 %v638_v0, %v630_v27 }
0x1323   :  { %v843_v12 = vpop.f32.mrf.mxu1 }
0x1324   :  { %v847_v46 = vadd.f32 %v843_v12, %v376_v4 }
0x1326   :  { %v1200_v13 = vmul.f32 -1.442695, %v847_v46 }
0x1328   :  { %1305 = vpow2.f32 %v1200_v13 }
0x132b   :  { %v845_v14 = vpop.f32.mrf.mxu1 }
0x132e   :  { %v1306_v15 = vpop.eup %1305 }
0x132f   :  { %v852_v17 = vadd.f32 1.0, %v1306_v15 }
0x1331   :  { %1307 = vrcp.f32 %v852_v17  ;;  %v864_v22 = vand.u32 2147483648, %v852_v17  ;;  %v862_v26 = vand.u32 2147483647, %v852_v17  ;;  %vm858_vm9 = vweird.f32 %v852_v17 }
0x1332   :  { %1309 = vtanh.f32 %v847_v46 }
0x1333   :  { %v865_v28 = vor.u32 1.1754944e-38, %v864_v22  ;;  %vm863_vm11 = vcmp.eq.f32.partialorder %v862_v26, 8.507059e+37  ;;  %1311 = vtanh.f32 %v640_v5 }
0x1337   :  { %v1308_v18 = vpop.eup %1307 }
0x1338   :  { %v854_v19 = vmul.f32 %v1308_v18, %v852_v17  ;;  %vm859_vm7 = vweird.f32 %v1308_v18  ;;  %v1310_v30 = vpop.eup %1309 }
0x1339   :  { %vm860_vm10 = vmor %vm858_vm9, %vm859_vm7  ;;  %v1312_v35 = vpop.eup %1311 }
0x133a   :  { %v855_v21 = vsub.f32 1.0, %v854_v19  ;;  %v520_v19 = vadd.f32 %v1519_v61, %v1572_v11 }
0x133c   :  { %v856_v23 = vmul.f32 %v1308_v18, %v855_v21 }
0x133e   :  { %v857_v31 = vadd.f32 %v1308_v18, %v856_v23 }
0x1340   :  { %v861_v29 = vsel %vm860_vm10, %v1308_v18, %v857_v31 }
0x1341   :  { %v866_v32 = vsel %vm863_vm11, %v865_v28, %v861_v29 }
0x1342   :  { %v868_v34 = vsel %vm1411_vm4, %v1310_v30, %v866_v32 }
0x1343   :  { %871 = vrot.lane.b32.xlu2 %v868_v34, %s1380_s1  ;;  %v869_v39 = vmul.f32 %v868_v34, %v820_v1 }
0x134b   :  { %643 = vrot.lane.b32.xlu2 %v1312_v35, %s1380_s1 }
0x139d   :  { %v872_v36 = vpop.permute.xlu2 %871 }
0x139e   :  { %v874_v58 = vmul.f32 %v872_v36, %v868_v34 }
0x13a0   :  { %876 = vrot.lane.b32.xlu1 %v874_v58, %s1381_s20 }
0x13a5   :  { %v644_v59 = vpop.permute.xlu2 %643 }
0x13a6   :  { %v646_v38 = vmul.f32 %v644_v59, %v629_v60 }
0x13a8   :  { %v647_v25 = vpack.c.bf16 %v646_v38, %v646_v38 }
0x13aa   :  { %649 = vrot.lane.b32.xlu1 %v647_v25, %s1381_s20 }
0x1412   :  { %v877_v42 = vpop.permute.xlu1 %876 }
0x1413   :  { %v879_v43 = vadd.f32 %v877_v42, %v869_v39 }
0x1415   :  { %1313 = vtanh.f32 %v879_v43 }
0x141b   :  { %v1314_v44 = vpop.eup %1313 }
0x141c   :  { %882 = vrot.lane.b32.xlu0 %v1314_v44, %s1380_s1  ;;  %v650_v37 = vpop.permute.xlu1 %649 }
0x141d   :  { %1193 = vmatmul.msk.bf16.vlgmr.msra.gmra.mxu2 %vm142_vm8, %v650_v37 }
0x148e   :  { %v883_v33 = vpop.permute.xlu0 %882 }
0x148f   :  { %v885_v45 = vmul.f32 %v883_v33, %v868_v34 }
0x1491   :  { %v886_v40 = vpack.c.bf16 %v885_v45, %v885_v45 }
0x1493   :  { %888 = vrot.lane.b32.xlu2 %v886_v40, %s1381_s20 }
0x14a0   :  { %v1633_v47 = vpop.f32.mrf.mxu2 }
0x14a8   :  { %v665_v48 = vpop.f32.mrf.mxu2 }
0x14a9   :  { %v592_v48 = vadd.f32 %v1519_v61, %v1604_v16 }
0x14ed   :  { %v889_v49 = vpop.permute.xlu2 %888 }
0x14ee   :  { %1201 = vmatmul.msk.bf16.vlgmr.msrb.gmra.mxu2 %vm142_vm8, %v889_v49 }
0x1571   :  { %v902_v52 = vpop.f32.mrf.mxu2 }
0x1572   :  { %v906_v53 = vadd.f32 %v902_v52, %v448_v50 }
0x1574   :  { %v1202_v54 = vmul.f32 -1.442695, %v906_v53 }
0x1576   :  { %1315 = vpow2.f32 %v1202_v54 }
0x1579   :  { %v904_v55 = vpop.f32.mrf.mxu2 }
0x157c   :  { %v1316_v6 = vpop.eup %1315 }
0x157d   :  { %v911_v56 = vadd.f32 1.0, %v1316_v6 }
0x157f   :  { %1317 = vrcp.f32 %v911_v56  ;;  %v923_v62 = vand.u32 2147483648, %v911_v56  ;;  %v921_v1 = vand.u32 2147483647, %v911_v56  ;;  %vm917_vm13 = vweird.f32 %v911_v56 }
0x1580   :  { %1319 = vtanh.f32 %v906_v53 }
0x1581   :  { %v924_v24 = vor.u32 1.1754944e-38, %v923_v62  ;;  %vm922_vm15 = vcmp.eq.f32.partialorder %v921_v1, 8.507059e+37 }
0x1585   :  { %v1318_v41 = vpop.eup %1317 }
0x1586   :  { %v913_v57 = vmul.f32 %v1318_v41, %v911_v56  ;;  %vm918_vm12 = vweird.f32 %v1318_v41  ;;  %v1320_v7 = vpop.eup %1319 }
0x1587   :  { %vm919_vm14 = vmor %vm917_vm13, %vm918_vm12 }
0x1588   :  { %v914_v60 = vsub.f32 1.0, %v913_v57 }
0x158a   :  { %v915_v63 = vmul.f32 %v1318_v41, %v914_v60 }
0x158c   :  { %v916_v2 = vadd.f32 %v1318_v41, %v915_v63 }
0x158e   :  { %v920_v3 = vsel %vm919_vm14, %v1318_v41, %v916_v2 }
0x158f   :  { %v925_v8 = vsel %vm922_vm15, %v924_v24, %v920_v3 }
0x1590   :  { %v927_v51 = vsel %vm1411_vm4, %v1320_v7, %v925_v8 }
0x1591   :  { %930 = vrot.lane.b32.xlu0 %v927_v51, %s1380_s1  ;;  %v928_v4 = vmul.f32 %v927_v51, %v879_v43 }
0x1603   :  { %v931_v9 = vpop.permute.xlu0 %930 }
0x1604   :  { %v933_v10 = vmul.f32 %v931_v9, %v927_v51 }
0x1606   :  { %935 = vrot.lane.b32.xlu1 %v933_v10, %s1381_s20 }
0x1678   :  { %v936_v12 = vpop.permute.xlu1 %935 }
0x1679   :  { %v938_v46 = vadd.f32 %v936_v12, %v928_v4 }
0x167b   :  { %1321 = vtanh.f32 %v938_v46 }
0x1681   :  { %v1322_v13 = vpop.eup %1321 }
0x1682   :  { %941 = vrot.lane.b32.xlu2 %v1322_v13, %s1380_s1 }
0x16dc   :  { %v942_v14 = vpop.permute.xlu2 %941 }
0x16dd   :  { %v944_v15 = vmul.f32 %v942_v14, %v927_v51 }
0x16df   :  { %v945_v17 = vpack.c.bf16 %v944_v15, %v944_v15  ;;  %v664_v15 = vadd.f32 %v1519_v61, %v1633_v47 }
0x16e1   :  { %947 = vrot.lane.b32.xlu0 %v945_v17, %s1381_s20 }
0x1753   :  { %v948_v18 = vpop.permute.xlu0 %947 }
0x1754   :  { %1203 = vmatmul.msk.bf16.vlgmr.msrb.gmra.mxu3 %vm142_vm8, %v948_v18 }
0x17d7   :  { %v961_v21 = vpop.f32.mrf.mxu3 }
0x17d8   :  { %v965_v22 = vadd.f32 %v961_v21, %v520_v19 }
0x17da   :  { %v1204_v23 = vmul.f32 -1.442695, %v965_v22 }
0x17dc   :  { %1323 = vpow2.f32 %v1204_v23 }
0x17df   :  { %v963_v26 = vpop.f32.mrf.mxu3 }
0x17e2   :  { %v1324_v0 = vpop.eup %1323 }
0x17e3   :  { %v970_v27 = vadd.f32 1.0, %v1324_v0 }
0x17e5   :  { %1325 = vrcp.f32 %v970_v27  ;;  %v982_v29 = vand.u32 2147483648, %v970_v27  ;;  %v980_v32 = vand.u32 2147483647, %v970_v27  ;;  %vm976_vm2 = vweird.f32 %v970_v27 }
0x17e6   :  { %1327 = vtanh.f32 %v965_v22 }
0x17e7   :  { %v983_v11 = vor.u32 1.1754944e-38, %v982_v29  ;;  %vm981_vm5 = vcmp.eq.f32.partialorder %v980_v32, 8.507059e+37 }
0x17eb   :  { %v1326_v31 = vpop.eup %1325 }
0x17ec   :  { %v972_v28 = vmul.f32 %v1326_v31, %v970_v27  ;;  %vm977_vm1 = vweird.f32 %v1326_v31  ;;  %v1328_v36 = vpop.eup %1327 }
0x17ed   :  { %vm978_vm3 = vmor %vm976_vm2, %vm977_vm1  ;;  %vm1160_vm1 = vcmask 7168  }
0x17ee   :  { %v973_v5 = vsub.f32 1.0, %v972_v28 }
0x17f0   :  { %v974_v30 = vmul.f32 %v1326_v31, %v973_v5 }
0x17f2   :  { %v975_v34 = vadd.f32 %v1326_v31, %v974_v30 }
0x17f4   :  { %v979_v35 = vsel %vm978_vm3, %v1326_v31, %v975_v34 }
0x17f5   :  { %v984_v58 = vsel %vm981_vm5, %v983_v11, %v979_v35  ;;  %v1218_v11 = vld [vmem:[#allocation2 + $0x80] ss:$0 sm:$0xff] }
0x17f6   :  { %v986_v59 = vsel %vm1411_vm4, %v1328_v36, %v984_v58 }
0x17f7   :  { %989 = vrot.lane.b32.xlu1 %v986_v59, %s1380_s1  ;;  %v987_v39 = vmul.f32 %v986_v59, %v938_v46 }
0x1869   :  { %v990_v38 = vpop.permute.xlu1 %989 }
0x186a   :  { %v992_v25 = vmul.f32 %v990_v38, %v986_v59 }
0x186c   :  { %994 = vrot.lane.b32.xlu2 %v992_v25, %s1381_s20 }
0x18c6   :  { %v995_v42 = vpop.permute.xlu2 %994 }
0x18c7   :  { %v997_v43 = vadd.f32 %v995_v42, %v987_v39 }
0x18c9   :  { %1329 = vtanh.f32 %v997_v43 }
0x18cf   :  { %v1330_v44 = vpop.eup %1329 }
0x18d0   :  { %1000 = vrot.lane.b32.xlu0 %v1330_v44, %s1380_s1 }
0x1942   :  { %v1001_v37 = vpop.permute.xlu0 %1000 }
0x1943   :  { %v1003_v33 = vmul.f32 %v1001_v37, %v986_v59 }
0x1945   :  { %v1004_v45 = vpack.c.bf16 %v1003_v33, %v1003_v33 }
0x1947   :  { %1006 = vrot.lane.b32.xlu1 %v1004_v45, %s1381_s20 }
0x19b9   :  { %v1007_v40 = vpop.permute.xlu1 %1006 }
0x19ba   :  { %1205 = vmatmul.msk.bf16.vlgmr.msrb.gmra.mxu0 %vm142_vm8, %v1007_v40 }
0x1a37   :  { %v1020_v49 = vpop.f32.mrf.mxu0 }
0x1a38   :  { %v1024_v50 = vadd.f32 %v1020_v49, %v592_v48 }
0x1a3a   :  { %v1206_v52 = vmul.f32 -1.442695, %v1024_v50 }
0x1a3c   :  { %1331 = vpow2.f32 %v1206_v52 }
0x1a3f   :  { %v1022_v53 = vpop.f32.mrf.mxu0 }
0x1a42   :  { %v1332_v54 = vpop.eup %1331 }
0x1a43   :  { %v1029_v55 = vadd.f32 1.0, %v1332_v54 }
0x1a45   :  { %1333 = vrcp.f32 %v1029_v55  ;;  %v1041_v57 = vand.u32 2147483648, %v1029_v55  ;;  %v1039_v62 = vand.u32 2147483647, %v1029_v55  ;;  %vm1035_vm6 = vweird.f32 %v1029_v55 }
0x1a46   :  { %1335 = vtanh.f32 %v1024_v50 }
0x1a47   :  { %v1042_v16 = vor.u32 1.1754944e-38, %v1041_v57  ;;  %vm1040_vm9 = vcmp.eq.f32.partialorder %v1039_v62, 8.507059e+37 }
0x1a4b   :  { %v1334_v6 = vpop.eup %1333 }
0x1a4c   :  { %v1031_v56 = vmul.f32 %v1334_v6, %v1029_v55  ;;  %vm1036_vm0 = vweird.f32 %v1334_v6  ;;  %v1336_v2 = vpop.eup %1335 }
0x1a4d   :  { %vm1037_vm7 = vmor %vm1035_vm6, %vm1036_vm0 }
0x1a4e   :  { %v1032_v41 = vsub.f32 1.0, %v1031_v56 }
0x1a50   :  { %v1033_v60 = vmul.f32 %v1334_v6, %v1032_v41 }
0x1a52   :  { %v1034_v63 = vadd.f32 %v1334_v6, %v1033_v60 }
0x1a54   :  { %v1038_v1 = vsel %vm1037_vm7, %v1334_v6, %v1034_v63 }
0x1a55   :  { %v1043_v24 = vsel %vm1040_vm9, %v1042_v16, %v1038_v1 }
0x1a56   :  { %v1045_v3 = vsel %vm1411_vm4, %v1336_v2, %v1043_v24 }
0x1a57   :  { %1048 = vrot.lane.b32.xlu2 %v1045_v3, %s1380_s1  ;;  %v1046_v51 = vmul.f32 %v1045_v3, %v997_v43 }
0x1ab1   :  { %v1049_v7 = vpop.permute.xlu2 %1048 }
0x1ab2   :  { %v1051_v8 = vmul.f32 %v1049_v7, %v1045_v3 }
0x1ab4   :  { %1053 = vrot.lane.b32.xlu0 %v1051_v8, %s1381_s20 }
0x1b26   :  { %v1054_v9 = vpop.permute.xlu0 %1053 }
0x1b27   :  { %v1056_v10 = vadd.f32 %v1054_v9, %v1046_v51 }
0x1b29   :  { %1337 = vtanh.f32 %v1056_v10 }
0x1b2f   :  { %v1338_v4 = vpop.eup %1337 }
0x1b30   :  { %1059 = vrot.lane.b32.xlu1 %v1338_v4, %s1380_s1 }
0x1ba2   :  { %v1060_v12 = vpop.permute.xlu1 %1059 }
0x1ba3   :  { %v1062_v46 = vmul.f32 %v1060_v12, %v1045_v3 }
0x1ba5   :  { %v1063_v13 = vpack.c.bf16 %v1062_v46, %v1062_v46 }
0x1ba7   :  { %1065 = vrot.lane.b32.xlu2 %v1063_v13, %s1381_s20 }
0x1c01   :  { %v1066_v14 = vpop.permute.xlu2 %1065 }
0x1c02   :  { %1207 = vmatmul.msk.bf16.vlgmr.msra.gmra.mxu1 %vm142_vm8, %v1066_v14 }
0x1c7f   :  { %v1079_v17 = vpop.f32.mrf.mxu1 }
0x1c80   :  { %v1083_v18 = vadd.f32 %v1079_v17, %v664_v15 }
0x1c82   :  { %v1208_v19 = vmul.f32 -1.442695, %v1083_v18 }
0x1c84   :  { %1339 = vpow2.f32 %v1208_v19 }
0x1c87   :  { %v1081_v21 = vpop.f32.mrf.mxu1 }
0x1c8a   :  { %v1340_v22 = vpop.eup %1339 }
0x1c8b   :  { %v1088_v23 = vadd.f32 1.0, %v1340_v22 }
0x1c8d   :  { %1341 = vrcp.f32 %v1088_v23  ;;  %v1100_v31 = vand.u32 2147483648, %v1088_v23  ;;  %v1098_v5 = vand.u32 2147483647, %v1088_v23  ;;  %vm1094_vm11 = vweird.f32 %v1088_v23 }
0x1c8e   :  { %1343 = vtanh.f32 %v1083_v18 }
0x1c8f   :  { %v1101_v61 = vor.u32 1.1754944e-38, %v1100_v31  ;;  %vm1099_vm13 = vcmp.eq.f32.partialorder %v1098_v5, 8.507059e+37 }
0x1c93   :  { %v1342_v26 = vpop.eup %1341 }
0x1c94   :  { %v1090_v0 = vmul.f32 %v1342_v26, %v1088_v23  ;;  %vm1095_vm10 = vweird.f32 %v1342_v26  ;;  %v1344_v30 = vpop.eup %1343 }
0x1c95   :  { %vm1096_vm12 = vmor %vm1094_vm11, %vm1095_vm10 }
0x1c96   :  { %v1091_v27 = vsub.f32 1.0, %v1090_v0 }
0x1c98   :  { %v1092_v28 = vmul.f32 %v1342_v26, %v1091_v27 }
0x1c9a   :  { %v1093_v29 = vadd.f32 %v1342_v26, %v1092_v28 }
0x1c9c   :  { %v1097_v47 = vsel %vm1096_vm12, %v1342_v26, %v1093_v29 }
0x1c9d   :  { %v1102_v32 = vsel %vm1099_vm13, %v1101_v61, %v1097_v47 }
0x1c9e   :  { %v1104_v34 = vsel %vm1411_vm4, %v1344_v30, %v1102_v32 }
0x1c9f   :  { %1107 = vrot.lane.b32.xlu0 %v1104_v34, %s1380_s1  ;;  %v1105_v58 = vmul.f32 %v1104_v34, %v1056_v10 }
0x1ca7   :  { %1125 = vrot.lane.b32.xlu0 %v1218_v11, %s1382_s21 }
0x1d11   :  { %v1108_v35 = vpop.permute.xlu0 %1107 }
0x1d12   :  { %v1110_v36 = vmul.f32 %v1108_v35, %v1104_v34 }
0x1d14   :  { %1112 = vrot.lane.b32.xlu1 %v1110_v36, %s1381_s20 }
0x1d19   :  { %v1126_v42 = vpop.permute.xlu0 %1125 }
0x1d86   :  { %v1113_v59 = vpop.permute.xlu1 %1112 }
0x1d87   :  { %v1115_v38 = vadd.f32 %v1113_v59, %v1105_v58 }
0x1d89   :  { %1345 = vtanh.f32 %v1115_v38 }
0x1d8f   :  { %v1346_v25 = vpop.eup %1345 }
0x1d90   :  { %1118 = vrot.lane.b32.xlu2 %v1346_v25, %s1380_s1 }
0x1dea   :  { %v1119_v39 = vpop.permute.xlu2 %1118 }
0x1deb   :  { %v1121_v20 = vmul.f32 %v1119_v39, %v1104_v34 }
0x1ded   :  { %v1128_v43 = vmul.f32 %v1126_v42, %v1121_v20 }
0x1def   :  { %1130 = vrot.lane.b32.xlu1 %v1128_v43, %s1381_s20 }
0x1e61   :  { %v1131_v44 = vpop.permute.xlu1 %1130 }
0x1e62   :  { %v1133_v37 = vsel %vm142_vm8, %v1131_v44, 0.0 }
0x1e63   :  { %1134 = vadd.xlane.f32.xlu2 %v1133_v37 }
0x1ed6   :  { %v1135_v33 = vpop.xlane.xlu2 %1134 }
0x1ed7   :  { %v1136_v45 = vadd.f32 %v1218_v11, %v1135_v33 }
0x1ed9   :  { %v1209_v40 = vmul.f32 -1.442695, %v1136_v45 }
0x1edb   :  { %1347 = vpow2.f32 %v1209_v40 }
0x1ee1   :  { %v1348_v48 = vpop.eup %1347 }
0x1ee2   :  { %v1140_v49 = vadd.f32 1.0, %v1348_v48 }
0x1ee4   :  { %1349 = vrcp.f32 %v1140_v49  ;;  %v1152_v54 = vand.u32 2147483648, %v1140_v49  ;;  %v1150_v6 = vand.u32 2147483647, %v1140_v49  ;;  %vm1146_vm14 = vweird.f32 %v1140_v49 }
0x1ee6   :  { %v1153_v41 = vor.u32 1.1754944e-38, %v1152_v54  ;;  %vm1151_vm8 = vcmp.eq.f32.partialorder %v1150_v6, 8.507059e+37 }
0x1eea   :  { %v1350_v50 = vpop.eup %1349 }
0x1eeb   :  { %v1142_v52 = vmul.f32 %v1350_v50, %v1140_v49  ;;  %vm1147_vm4 = vweird.f32 %v1350_v50 }
0x1eec   :  { %vm1148_vm15 = vmor %vm1146_vm14, %vm1147_vm4 }
0x1eed   :  { %v1143_v53 = vsub.f32 1.0, %v1142_v52 }
0x1eef   :  { %v1144_v55 = vmul.f32 %v1350_v50, %v1143_v53 }
0x1ef1   :  { %v1145_v56 = vadd.f32 %v1350_v50, %v1144_v55 }
0x1ef3   :  { %v1149_v57 = vsel %vm1148_vm15, %v1350_v50, %v1145_v56 }
0x1ef4   :  { %v1154_v60 = vsel %vm1151_vm8, %v1153_v41, %v1149_v57 }
0x1ef5   :  { %1157 = vrot.lane.b32.xlu0 %v1154_v60, %s1382_s21 }
0x1f67   :  { %v1158_v62 = vpop.permute.xlu0 %1157 }
0x1f68   :  { %1161 = vst.msk [vmem:[%s1679_s2] sm:$0xff] %vm1160_vm1, %v1158_v62 }
0x1f69   :  { %1166 = vsyncpa [#allocation3], 1 }

</bundles_post_ra>
